<compile_context>
chip_gen: v7x
topology: tpu7x:2x2x1
jax: 0.10.0
libtpu: 0.0.40
codegen_flags: <defaults>
</compile_context>

<pallas_src>
import math

import jax
import jax.numpy as jnp
from jax import lax
from jax.experimental import pallas as pl
from jax.experimental.pallas import tpu as pltpu


# ----------------------------------------------------------------------------
# Single fused kernel: all layers + decoder.  All operands are whole-array
# VMEM blocks (no grid); layer weights are stacked on a leading L axis and
# indexed with a static Python loop.
# ----------------------------------------------------------------------------
def fused_transformer_kernel(x_ref, bnsc_ref, bnsh_ref, wq_ref, wk_ref, wv_ref,
                             er_ref, wr_ref, br_ref, sel_ref, minv_ref,
                             wdec_ref, bdec_ref, out_ref):
    bt, e = x_ref.shape                       # batch*seq rows, d_model
    L = wq_ref.shape[0]                       # number of layers
    s = er_ref.shape[1]                       # head dim
    t = er_ref.shape[2]                       # seq_len
    h = e // s                                # heads
    b = bt // t                               # batch
    g = e // t                                # columns-per-scramble-group
    inv_e_quarter = 1.0 / (float(e) ** 0.25)

    # hoisted constants (layer independent)
    invalid = minv_ref[...] != 0.0            # (bt,bt) causal + cross-batch mask
    sels = [sel_ref[a] for a in range(g)]     # scramble selection mats, each (t,e)

    x = x_ref[...]                            # activation stays VMEM resident

    for l in range(L):                        # static unroll over layers
        # eval-mode BatchNorm1d (channel = seq position), pre-broadcast params
        xl = x * bnsc_ref[l] + bnsh_ref[l]

        # per-head q/k/v Linears == one block-diagonal (e,e) matmul each
        q = jnp.dot(xl, wq_ref[l], preferred_element_type=jnp.float32)
        k = jnp.dot(xl, wk_ref[l], preferred_element_type=jnp.float32)
        v = jnp.dot(xl, wv_ref[l], preferred_element_type=jnp.float32)
        er = er_ref[l]                        # (s, t)

        reps = []
        for hd in range(h):                   # h is small; static unroll
            qh = q[:, hd * s:(hd + 1) * s]    # (bt, s)
            kh = k[:, hd * s:(hd + 1) * s]
            vh = v[:, hd * s:(hd + 1) * s]

            # relative-position term uses the UNscaled queries (as in PyTorch)
            srel = jnp.dot(qh, er, preferred_element_type=jnp.float32)   # (bt, t)
            srel = jnp.concatenate([srel] * b, axis=1)                   # (bt, bt)

            scores = lax.dot_general(qh * inv_e_quarter, kh * inv_e_quarter,
                                     (((1,), (1,)), ((), ())),
                                     preferred_element_type=jnp.float32)  # q @ k^T
            scores = scores + srel
            # masked_fill: strictly-upper causal AND cross-batch entries
            scores = jnp.where(invalid, jnp.float32(-1e9), scores)

            m = jnp.max(scores, axis=-1, keepdims=True)
            p = jnp.exp(scores - m)
            denom = jnp.sum(p, axis=-1, keepdims=True)
            attn = p * pl.reciprocal(denom, approx=True)
            # dropout(p) is identity in eval mode
            reps.append(jnp.dot(attn, vh, preferred_element_type=jnp.float32))
        ho = jnp.concatenate(reps, axis=-1)                              # (bt, e)

        # exact reproduction of out.transpose(1,2).contiguous().view(b,t,e):
        # scr[i, a*t + r] = ho[r, i*g + a] (per batch), realized with g
        # selection matmuls (sel_a @ ho^T) + lane concat — no in-kernel reshape.
        scr_parts = []
        for bb in range(b):
            hob = ho[bb * t:(bb + 1) * t, :]                             # (t, e)
            pieces = [lax.dot_general(sel, hob, (((1,), (1,)), ((), ())),
                                      preferred_element_type=jnp.float32)
                      for sel in sels]                                   # (t, t) each
            scr_parts.append(jnp.concatenate(pieces, axis=1))            # (t, e)
        scr = jnp.concatenate(scr_parts, axis=0)                         # (bt, e)

        # recombine_heads Linear(e, e)
        x = jnp.dot(scr, wr_ref[l], preferred_element_type=jnp.float32) + br_ref[l]

    # final decoder Linear(e, num_token), zero-padded to lane-dense 128 output
    out_ref[...] = (jnp.dot(x, wdec_ref[...], preferred_element_type=jnp.float32)
                    + bdec_ref[...])


# ----------------------------------------------------------------------------
# Host-side helpers + wrapper
# ----------------------------------------------------------------------------
def _block_diag(w):  # (h, s, s) -> (h*s, h*s) block-diagonal
    h, s, _ = w.shape
    e = h * s
    out = jnp.zeros((e, e), w.dtype)
    for hd in range(h):
        out = out.at[hd * s:(hd + 1) * s, hd * s:(hd + 1) * s].set(w[hd])
    return out


def transformer_forward(source, emb, pos_embeds, layers, wdec, bdec, num_inputs):
    # source: (seq_len, batch) int32 token ids
    x = emb[source] * math.sqrt(num_inputs)                  # (seq, batch, e-3)
    x = jnp.concatenate([x, pos_embeds], axis=2)             # (seq, batch, e)
    x = jnp.transpose(x, (1, 0, 2))                          # (batch, seq, e)
    b, t, e = x.shape
    x2d = x.reshape(b * t, e)

    # TODO(synk): the in-kernel scramble decomposition assumes d_model % seq_len == 0
    # (true for this module's test shapes); the PyTorch view works for any shapes.
    assert e % t == 0, "fused scramble assumes d_model % seq_len == 0"
    g = e // t
    eps = 1e-5

    bnsc, bnsh, wqs, wks, wvs, ers, wrs, brs = [], [], [], [], [], [], [], []
    for lp in layers:
        scale = lp["gamma"] / jnp.sqrt(lp["rv"] + eps)       # (t,)
        shift = lp["beta"] - lp["rm"] * scale                # (t,)
        bnsc.append(jnp.broadcast_to(scale[None, :, None], (b, t, e)).reshape(b * t, e))
        bnsh.append(jnp.broadcast_to(shift[None, :, None], (b, t, e)).reshape(b * t, e))
        wqs.append(_block_diag(lp["wq"]))
        wks.append(_block_diag(lp["wk"]))
        wvs.append(_block_diag(lp["wv"]))
        ers.append(lp["er"])
        wrs.append(lp["wr"])
        brs.append(lp["br"])
    bnsc = jnp.stack(bnsc); bnsh = jnp.stack(bnsh)
    wqs = jnp.stack(wqs); wks = jnp.stack(wks); wvs = jnp.stack(wvs)
    ers = jnp.stack(ers); wrs = jnp.stack(wrs); brs = jnp.stack(brs)

    # scramble selection matrices: sel[a, i, c] = 1 iff c == i*g + a
    sel = (jnp.arange(e)[None, None, :] ==
           (jnp.arange(t)[None, :, None] * g + jnp.arange(g)[:, None, None])
           ).astype(jnp.float32)                             # (g, t, e)

    # combined mask over batch-stacked (b*t, b*t) scores: invalid iff
    # different batch OR strictly-upper (non-causal) within the batch block.
    R = jnp.arange(b * t); C = jnp.arange(b * t)
    same_batch = (R[:, None] // t) == (C[None, :] // t)
    causal_ok = (C[None, :] % t) <= (R[:, None] % t)
    mask_invalid = jnp.logical_not(same_batch & causal_ok).astype(jnp.float32)

    # decoder weights zero-padded to a lane-dense (128-wide) output slab
    num_token = wdec.shape[1]
    n_pad = ((num_token + 127) // 128) * 128
    wdec_p = jnp.zeros((e, n_pad), jnp.float32).at[:, :num_token].set(wdec)
    bdec_p = jnp.zeros((1, n_pad), jnp.float32).at[:, :num_token].set(bdec)

    out2d = pl.pallas_call(
        fused_transformer_kernel,
        out_shape=jax.ShapeDtypeStruct((b * t, n_pad), jnp.float32),
    )(x2d, bnsc, bnsh, wqs, wks, wvs, ers, wrs, brs, sel, mask_invalid,
      wdec_p, bdec_p)

    op = out2d[:, :num_token].reshape(b, t, num_token)
    return jnp.transpose(op, (1, 0, 2))                      # (seq, batch, num_token)


# ----------------------------------------------------------------------------
# Plain-JAX reference (mirrors the PyTorch code 1:1) for verification.
# ----------------------------------------------------------------------------
def transformer_reference(source, emb, pos_embeds, layers, wdec, bdec, num_inputs):
    HI = jax.lax.Precision.HIGHEST
    x = emb[source] * math.sqrt(num_inputs)
    x = jnp.concatenate([x, pos_embeds], axis=2)             # (seq, batch, e)
    x = jnp.transpose(x, (1, 0, 2))                          # (b, t, e)
    b, t, e = x.shape
    eps = 1e-5
    for lp in layers:
        xb = ((x - lp["rm"][None, :, None]) / jnp.sqrt(lp["rv"][None, :, None] + eps)
              * lp["gamma"][None, :, None] + lp["beta"][None, :, None])
        h = lp["wq"].shape[0]; s = e // h
        reps = []
        for hd in range(h):
            xh = xb[:, :, hd * s:(hd + 1) * s]
            q = jnp.einsum("bts,su->btu", xh, lp["wq"][hd], precision=HI)
            k = jnp.einsum("bts,su->btu", xh, lp["wk"][hd], precision=HI)
            v = jnp.einsum("bts,su->btu", xh, lp["wv"][hd], precision=HI)
            srel = jnp.einsum("bts,sj->btj", q, lp["er"], precision=HI)
            qs = q / (e ** 0.25); ks = k / (e ** 0.25)
            scores = jnp.einsum("bts,bjs->btj", qs, ks, precision=HI) + srel
            mask = jnp.triu(jnp.ones((t, t), bool), 1)
            scores = jnp.where(mask[None], -1e9, scores)
            p = jax.nn.softmax(scores, axis=-1)
            reps.append(jnp.einsum("btj,bjs->bts", p, v, precision=HI))
        ho = jnp.concatenate(reps, axis=-1)
        scr = jnp.reshape(jnp.transpose(ho, (0, 2, 1)), (b, t, e))   # the "scramble"
        x = jnp.einsum("bte,ef->btf", scr, lp["wr"], precision=HI) + lp["br"][None]
    op = jnp.einsum("bte,ef->btf", x, wdec, precision=HI) + bdec[None]
    return jnp.transpose(op, (1, 0, 2))


# ----------------------------------------------------------------------------
if __name__ == "__main__":
    seq_len = 8
    batch_size = 2
    num_token = 16
    num_inputs = 32          # d_model (divisible by num_heads and by seq_len)
    num_heads = 4
    num_layers = 2
    s = num_inputs // num_heads

    key = jax.random.PRNGKey(0)
    keys = iter(jax.random.split(key, 64))

    emb = 0.3 * jax.random.normal(next(keys), (num_token, num_inputs - 3), jnp.float32)
    pos = 0.3 * jax.random.normal(next(keys), (seq_len, 1, 3), jnp.float32)
    pos_embeds = jnp.tile(pos, (1, batch_size, 1))           # (seq, batch, 3)

    layers = []
    for _ in range(num_layers):
        lp = {
            # BatchNorm1d(seq_len) params / running stats (eval mode)
            "gamma": 1.0 + 0.1 * jax.random.normal(next(keys), (seq_len,), jnp.float32),
            "beta": 0.1 * jax.random.normal(next(keys), (seq_len,), jnp.float32),
            "rm": jnp.zeros((seq_len,), jnp.float32),
            "rv": jnp.ones((seq_len,), jnp.float32),
            # per-head q/k/v projection weights, stored (in, out), stacked on head
            "wq": jax.random.normal(next(keys), (num_heads, s, s), jnp.float32) / math.sqrt(s),
            "wk": jax.random.normal(next(keys), (num_heads, s, s), jnp.float32) / math.sqrt(s),
            "wv": jax.random.normal(next(keys), (num_heads, s, s), jnp.float32) / math.sqrt(s),
            # relative-position matrix Er (s, seq_len)
            "er": 0.3 * jax.random.normal(next(keys), (s, seq_len), jnp.float32),
            # recombine_heads Linear(e, e): weight (in, out), bias (1, e)
            "wr": jax.random.normal(next(keys), (num_inputs, num_inputs), jnp.float32)
                  / math.sqrt(num_inputs),
            "br": 0.01 * jax.random.normal(next(keys), (1, num_inputs), jnp.float32),
        }
        layers.append(lp)

    wdec = jax.random.normal(next(keys), (num_inputs, num_token), jnp.float32) / math.sqrt(num_inputs)
    bdec = 0.01 * jax.random.normal(next(keys), (1, num_token), jnp.float32)

    source = jax.random.randint(next(keys), (seq_len, batch_size), 0, num_token, jnp.int32)

    out = transformer_forward(source, emb, pos_embeds, layers, wdec, bdec, num_inputs)
    out = jax.block_until_ready(out)

    assert out.shape == (seq_len, batch_size, num_token), out.shape
    assert bool(jnp.all(jnp.isfinite(out)))

    ref = transformer_reference(source, emb, pos_embeds, layers, wdec, bdec, num_inputs)
    ref = jax.block_until_ready(ref)
    max_diff = float(jnp.max(jnp.abs(out - ref)))
    assert bool(jnp.allclose(out, ref, atol=5e-2, rtol=5e-2)), max_diff

    # TODO(synk): Dropout / training-mode BatchNorm are stochastic/stateful; this
    # implements deterministic eval-mode semantics.
    print("KERNEL_OK")
</pallas_src>

<mosaic_0001>
module attributes {stable_mosaic.version = 11 : i64} {
  func.func @fused_transformer_kernel(%arg0: memref<16x32xf32, #tpu.memory_space<vmem>>, %arg1: memref<2x16x32xf32, #tpu.memory_space<vmem>>, %arg2: memref<2x16x32xf32, #tpu.memory_space<vmem>>, %arg3: memref<2x32x32xf32, #tpu.memory_space<vmem>>, %arg4: memref<2x32x32xf32, #tpu.memory_space<vmem>>, %arg5: memref<2x32x32xf32, #tpu.memory_space<vmem>>, %arg6: memref<2x8x8xf32, #tpu.memory_space<vmem>>, %arg7: memref<2x32x32xf32, #tpu.memory_space<vmem>>, %arg8: memref<2x1x32xf32, #tpu.memory_space<vmem>>, %arg9: memref<4x8x32xf32, #tpu.memory_space<vmem>>, %arg10: memref<16x16xf32, #tpu.memory_space<vmem>>, %arg11: memref<32x128xf32, #tpu.memory_space<vmem>>, %arg12: memref<1x128xf32, #tpu.memory_space<vmem>>, %arg13: memref<16x128xf32, #tpu.memory_space<vmem>>) attributes {dimension_semantics = [], scalar_prefetch = 0 : i64, scratch_operands = 0 : i64, tpu.core_type = #tpu.core_type<tc>} {
    %c0 = arith.constant 0 : index
    %c0_0 = arith.constant 0 : index
    %0 = vector.load %arg10[%c0, %c0_0] : memref<16x16xf32, #tpu.memory_space<vmem>>, vector<16x16xf32>
    %cst = arith.constant 0.000000e+00 : f32
    %1 = vector.broadcast %cst : f32 to vector<16x16xf32>
    %2 = arith.cmpf one, %0, %1 : vector<16x16xf32>
    %c0_1 = arith.constant 0 : index
    %c0_2 = arith.constant 0 : index
    %c0_3 = arith.constant 0 : index
    %3 = vector.load %arg9[%c0_1, %c0_2, %c0_3] : memref<4x8x32xf32, #tpu.memory_space<vmem>>, vector<1x8x32xf32>
    %4 = vector.shape_cast %3 : vector<1x8x32xf32> to vector<8x32xf32>
    %c1 = arith.constant 1 : index
    %c0_4 = arith.constant 0 : index
    %c0_5 = arith.constant 0 : index
    %5 = vector.load %arg9[%c1, %c0_4, %c0_5] : memref<4x8x32xf32, #tpu.memory_space<vmem>>, vector<1x8x32xf32>
    %6 = vector.shape_cast %5 : vector<1x8x32xf32> to vector<8x32xf32>
    %c2 = arith.constant 2 : index
    %c0_6 = arith.constant 0 : index
    %c0_7 = arith.constant 0 : index
    %7 = vector.load %arg9[%c2, %c0_6, %c0_7] : memref<4x8x32xf32, #tpu.memory_space<vmem>>, vector<1x8x32xf32>
    %8 = vector.shape_cast %7 : vector<1x8x32xf32> to vector<8x32xf32>
    %c3 = arith.constant 3 : index
    %c0_8 = arith.constant 0 : index
    %c0_9 = arith.constant 0 : index
    %9 = vector.load %arg9[%c3, %c0_8, %c0_9] : memref<4x8x32xf32, #tpu.memory_space<vmem>>, vector<1x8x32xf32>
    %10 = vector.shape_cast %9 : vector<1x8x32xf32> to vector<8x32xf32>
    %c0_10 = arith.constant 0 : index
    %c0_11 = arith.constant 0 : index
    %11 = vector.load %arg0[%c0_10, %c0_11] : memref<16x32xf32, #tpu.memory_space<vmem>>, vector<16x32xf32>
    %c0_12 = arith.constant 0 : index
    %c0_13 = arith.constant 0 : index
    %c0_14 = arith.constant 0 : index
    %12 = vector.load %arg1[%c0_12, %c0_13, %c0_14] : memref<2x16x32xf32, #tpu.memory_space<vmem>>, vector<1x16x32xf32>
    %13 = vector.shape_cast %12 : vector<1x16x32xf32> to vector<16x32xf32>
    %14 = arith.mulf %11, %13 : vector<16x32xf32>
    %c0_15 = arith.constant 0 : index
    %c0_16 = arith.constant 0 : index
    %c0_17 = arith.constant 0 : index
    %15 = vector.load %arg2[%c0_15, %c0_16, %c0_17] : memref<2x16x32xf32, #tpu.memory_space<vmem>>, vector<1x16x32xf32>
    %16 = vector.shape_cast %15 : vector<1x16x32xf32> to vector<16x32xf32>
    %17 = arith.addf %14, %16 : vector<16x32xf32>
    %c0_18 = arith.constant 0 : index
    %c0_19 = arith.constant 0 : index
    %c0_20 = arith.constant 0 : index
    %18 = vector.load %arg3[%c0_18, %c0_19, %c0_20] : memref<2x32x32xf32, #tpu.memory_space<vmem>>, vector<1x32x32xf32>
    %19 = vector.shape_cast %18 : vector<1x32x32xf32> to vector<32x32xf32>
    %cst_21 = arith.constant dense<0.000000e+00> : vector<16x32xf32>
    %20 = tpu.matmul %17, %19, %cst_21 {dimension_numbers = #tpu.dot_dimension_numbers<[1], [0], [0], [1], [0, 0, 1, 1], [], []>} : vector<16x32xf32>, vector<32x32xf32>, vector<16x32xf32> -> vector<16x32xf32>
    %c0_22 = arith.constant 0 : index
    %c0_23 = arith.constant 0 : index
    %c0_24 = arith.constant 0 : index
    %21 = vector.load %arg4[%c0_22, %c0_23, %c0_24] : memref<2x32x32xf32, #tpu.memory_space<vmem>>, vector<1x32x32xf32>
    %22 = vector.shape_cast %21 : vector<1x32x32xf32> to vector<32x32xf32>
    %cst_25 = arith.constant dense<0.000000e+00> : vector<16x32xf32>
    %23 = tpu.matmul %17, %22, %cst_25 {dimension_numbers = #tpu.dot_dimension_numbers<[1], [0], [0], [1], [0, 0, 1, 1], [], []>} : vector<16x32xf32>, vector<32x32xf32>, vector<16x32xf32> -> vector<16x32xf32>
    %c0_26 = arith.constant 0 : index
    %c0_27 = arith.constant 0 : index
    %c0_28 = arith.constant 0 : index
    %24 = vector.load %arg5[%c0_26, %c0_27, %c0_28] : memref<2x32x32xf32, #tpu.memory_space<vmem>>, vector<1x32x32xf32>
    %25 = vector.shape_cast %24 : vector<1x32x32xf32> to vector<32x32xf32>
    %cst_29 = arith.constant dense<0.000000e+00> : vector<16x32xf32>
    %26 = tpu.matmul %17, %25, %cst_29 {dimension_numbers = #tpu.dot_dimension_numbers<[1], [0], [0], [1], [0, 0, 1, 1], [], []>} : vector<16x32xf32>, vector<32x32xf32>, vector<16x32xf32> -> vector<16x32xf32>
    %c0_30 = arith.constant 0 : index
    %c0_31 = arith.constant 0 : index
    %c0_32 = arith.constant 0 : index
    %27 = vector.load %arg6[%c0_30, %c0_31, %c0_32] : memref<2x8x8xf32, #tpu.memory_space<vmem>>, vector<1x8x8xf32>
    %28 = vector.shape_cast %27 : vector<1x8x8xf32> to vector<8x8xf32>
    %29 = vector.extract_strided_slice %20 {offsets = [0, 0], sizes = [16, 8], strides = [1, 1]} : vector<16x32xf32> to vector<16x8xf32>
    %30 = vector.extract_strided_slice %23 {offsets = [0, 0], sizes = [16, 8], strides = [1, 1]} : vector<16x32xf32> to vector<16x8xf32>
    %31 = vector.extract_strided_slice %26 {offsets = [0, 0], sizes = [16, 8], strides = [1, 1]} : vector<16x32xf32> to vector<16x8xf32>
    %cst_33 = arith.constant dense<0.000000e+00> : vector<16x8xf32>
    %32 = tpu.matmul %29, %28, %cst_33 {dimension_numbers = #tpu.dot_dimension_numbers<[1], [0], [0], [1], [0, 0, 1, 1], [], []>} : vector<16x8xf32>, vector<8x8xf32>, vector<16x8xf32> -> vector<16x8xf32>
    %33 = tpu.concatenate %32, %32 in 1 : vector<16x8xf32>, vector<16x8xf32> -> vector<16x16xf32>
    %cst_34 = arith.constant 0.420448214 : f32
    %34 = vector.broadcast %cst_34 : f32 to vector<16x8xf32>
    %35 = arith.mulf %29, %34 : vector<16x8xf32>
    %cst_35 = arith.constant 0.420448214 : f32
    %36 = vector.broadcast %cst_35 : f32 to vector<16x8xf32>
    %37 = arith.mulf %30, %36 : vector<16x8xf32>
    %cst_36 = arith.constant dense<0.000000e+00> : vector<16x16xf32>
    %38 = tpu.matmul %35, %37, %cst_36 {dimension_numbers = #tpu.dot_dimension_numbers<[1], [1], [0], [0], [0, 0, 1, 0], [], []>} : vector<16x8xf32>, vector<16x8xf32>, vector<16x16xf32> -> vector<16x16xf32>
    %39 = arith.addf %38, %33 : vector<16x16xf32>
    %cst_37 = arith.constant -1.000000e+09 : f32
    %40 = vector.broadcast %cst_37 : f32 to vector<16x16xf32>
    %41 = arith.select %2, %40, %39 : vector<16x16xi1>, vector<16x16xf32>
    %cst_38 = arith.constant dense<0xFF800000> : vector<16xf32>
    %42 = vector.multi_reduction <maximumf>, %41, %cst_38 [1] : vector<16x16xf32> to vector<16xf32>
    %43 = vector.shape_cast %42 : vector<16xf32> to vector<16x1xf32>
    %44 = vector.broadcast %43 : vector<16x1xf32> to vector<16x16xf32>
    %45 = arith.subf %41, %44 : vector<16x16xf32>
    %46 = math.exp %45 : vector<16x16xf32>
    %cst_39 = arith.constant dense<0.000000e+00> : vector<16xf32>
    %47 = vector.multi_reduction <add>, %46, %cst_39 [1] : vector<16x16xf32> to vector<16xf32>
    %48 = vector.shape_cast %47 : vector<16xf32> to vector<16x1xf32>
    %49 = tpu.reciprocal %48 {approx = true} : vector<16x1xf32> -> vector<16x1xf32>
    %50 = vector.broadcast %49 : vector<16x1xf32> to vector<16x16xf32>
    %51 = arith.mulf %46, %50 : vector<16x16xf32>
    %cst_40 = arith.constant dense<0.000000e+00> : vector<16x8xf32>
    %52 = tpu.matmul %51, %31, %cst_40 {dimension_numbers = #tpu.dot_dimension_numbers<[1], [0], [0], [1], [0, 0, 1, 1], [], []>} : vector<16x16xf32>, vector<16x8xf32>, vector<16x8xf32> -> vector<16x8xf32>
    %53 = vector.extract_strided_slice %20 {offsets = [0, 8], sizes = [16, 8], strides = [1, 1]} : vector<16x32xf32> to vector<16x8xf32>
    %54 = vector.extract_strided_slice %23 {offsets = [0, 8], sizes = [16, 8], strides = [1, 1]} : vector<16x32xf32> to vector<16x8xf32>
    %55 = vector.extract_strided_slice %26 {offsets = [0, 8], sizes = [16, 8], strides = [1, 1]} : vector<16x32xf32> to vector<16x8xf32>
    %cst_41 = arith.constant dense<0.000000e+00> : vector<16x8xf32>
    %56 = tpu.matmul %53, %28, %cst_41 {dimension_numbers = #tpu.dot_dimension_numbers<[1], [0], [0], [1], [0, 0, 1, 1], [], []>} : vector<16x8xf32>, vector<8x8xf32>, vector<16x8xf32> -> vector<16x8xf32>
    %57 = tpu.concatenate %56, %56 in 1 : vector<16x8xf32>, vector<16x8xf32> -> vector<16x16xf32>
    %cst_42 = arith.constant 0.420448214 : f32
    %58 = vector.broadcast %cst_42 : f32 to vector<16x8xf32>
    %59 = arith.mulf %53, %58 : vector<16x8xf32>
    %cst_43 = arith.constant 0.420448214 : f32
    %60 = vector.broadcast %cst_43 : f32 to vector<16x8xf32>
    %61 = arith.mulf %54, %60 : vector<16x8xf32>
    %cst_44 = arith.constant dense<0.000000e+00> : vector<16x16xf32>
    %62 = tpu.matmul %59, %61, %cst_44 {dimension_numbers = #tpu.dot_dimension_numbers<[1], [1], [0], [0], [0, 0, 1, 0], [], []>} : vector<16x8xf32>, vector<16x8xf32>, vector<16x16xf32> -> vector<16x16xf32>
    %63 = arith.addf %62, %57 : vector<16x16xf32>
    %cst_45 = arith.constant -1.000000e+09 : f32
    %64 = vector.broadcast %cst_45 : f32 to vector<16x16xf32>
    %65 = arith.select %2, %64, %63 : vector<16x16xi1>, vector<16x16xf32>
    %cst_46 = arith.constant dense<0xFF800000> : vector<16xf32>
    %66 = vector.multi_reduction <maximumf>, %65, %cst_46 [1] : vector<16x16xf32> to vector<16xf32>
    %67 = vector.shape_cast %66 : vector<16xf32> to vector<16x1xf32>
    %68 = vector.broadcast %67 : vector<16x1xf32> to vector<16x16xf32>
    %69 = arith.subf %65, %68 : vector<16x16xf32>
    %70 = math.exp %69 : vector<16x16xf32>
    %cst_47 = arith.constant dense<0.000000e+00> : vector<16xf32>
    %71 = vector.multi_reduction <add>, %70, %cst_47 [1] : vector<16x16xf32> to vector<16xf32>
    %72 = vector.shape_cast %71 : vector<16xf32> to vector<16x1xf32>
    %73 = tpu.reciprocal %72 {approx = true} : vector<16x1xf32> -> vector<16x1xf32>
    %74 = vector.broadcast %73 : vector<16x1xf32> to vector<16x16xf32>
    %75 = arith.mulf %70, %74 : vector<16x16xf32>
    %cst_48 = arith.constant dense<0.000000e+00> : vector<16x8xf32>
    %76 = tpu.matmul %75, %55, %cst_48 {dimension_numbers = #tpu.dot_dimension_numbers<[1], [0], [0], [1], [0, 0, 1, 1], [], []>} : vector<16x16xf32>, vector<16x8xf32>, vector<16x8xf32> -> vector<16x8xf32>
    %77 = vector.extract_strided_slice %20 {offsets = [0, 16], sizes = [16, 8], strides = [1, 1]} : vector<16x32xf32> to vector<16x8xf32>
    %78 = vector.extract_strided_slice %23 {offsets = [0, 16], sizes = [16, 8], strides = [1, 1]} : vector<16x32xf32> to vector<16x8xf32>
    %79 = vector.extract_strided_slice %26 {offsets = [0, 16], sizes = [16, 8], strides = [1, 1]} : vector<16x32xf32> to vector<16x8xf32>
    %cst_49 = arith.constant dense<0.000000e+00> : vector<16x8xf32>
    %80 = tpu.matmul %77, %28, %cst_49 {dimension_numbers = #tpu.dot_dimension_numbers<[1], [0], [0], [1], [0, 0, 1, 1], [], []>} : vector<16x8xf32>, vector<8x8xf32>, vector<16x8xf32> -> vector<16x8xf32>
    %81 = tpu.concatenate %80, %80 in 1 : vector<16x8xf32>, vector<16x8xf32> -> vector<16x16xf32>
    %cst_50 = arith.constant 0.420448214 : f32
    %82 = vector.broadcast %cst_50 : f32 to vector<16x8xf32>
    %83 = arith.mulf %77, %82 : vector<16x8xf32>
    %cst_51 = arith.constant 0.420448214 : f32
    %84 = vector.broadcast %cst_51 : f32 to vector<16x8xf32>
    %85 = arith.mulf %78, %84 : vector<16x8xf32>
    %cst_52 = arith.constant dense<0.000000e+00> : vector<16x16xf32>
    %86 = tpu.matmul %83, %85, %cst_52 {dimension_numbers = #tpu.dot_dimension_numbers<[1], [1], [0], [0], [0, 0, 1, 0], [], []>} : vector<16x8xf32>, vector<16x8xf32>, vector<16x16xf32> -> vector<16x16xf32>
    %87 = arith.addf %86, %81 : vector<16x16xf32>
    %cst_53 = arith.constant -1.000000e+09 : f32
    %88 = vector.broadcast %cst_53 : f32 to vector<16x16xf32>
    %89 = arith.select %2, %88, %87 : vector<16x16xi1>, vector<16x16xf32>
    %cst_54 = arith.constant dense<0xFF800000> : vector<16xf32>
    %90 = vector.multi_reduction <maximumf>, %89, %cst_54 [1] : vector<16x16xf32> to vector<16xf32>
    %91 = vector.shape_cast %90 : vector<16xf32> to vector<16x1xf32>
    %92 = vector.broadcast %91 : vector<16x1xf32> to vector<16x16xf32>
    %93 = arith.subf %89, %92 : vector<16x16xf32>
    %94 = math.exp %93 : vector<16x16xf32>
    %cst_55 = arith.constant dense<0.000000e+00> : vector<16xf32>
    %95 = vector.multi_reduction <add>, %94, %cst_55 [1] : vector<16x16xf32> to vector<16xf32>
    %96 = vector.shape_cast %95 : vector<16xf32> to vector<16x1xf32>
    %97 = tpu.reciprocal %96 {approx = true} : vector<16x1xf32> -> vector<16x1xf32>
    %98 = vector.broadcast %97 : vector<16x1xf32> to vector<16x16xf32>
    %99 = arith.mulf %94, %98 : vector<16x16xf32>
    %cst_56 = arith.constant dense<0.000000e+00> : vector<16x8xf32>
    %100 = tpu.matmul %99, %79, %cst_56 {dimension_numbers = #tpu.dot_dimension_numbers<[1], [0], [0], [1], [0, 0, 1, 1], [], []>} : vector<16x16xf32>, vector<16x8xf32>, vector<16x8xf32> -> vector<16x8xf32>
    %101 = vector.extract_strided_slice %20 {offsets = [0, 24], sizes = [16, 8], strides = [1, 1]} : vector<16x32xf32> to vector<16x8xf32>
    %102 = vector.extract_strided_slice %23 {offsets = [0, 24], sizes = [16, 8], strides = [1, 1]} : vector<16x32xf32> to vector<16x8xf32>
    %103 = vector.extract_strided_slice %26 {offsets = [0, 24], sizes = [16, 8], strides = [1, 1]} : vector<16x32xf32> to vector<16x8xf32>
    %cst_57 = arith.constant dense<0.000000e+00> : vector<16x8xf32>
    %104 = tpu.matmul %101, %28, %cst_57 {dimension_numbers = #tpu.dot_dimension_numbers<[1], [0], [0], [1], [0, 0, 1, 1], [], []>} : vector<16x8xf32>, vector<8x8xf32>, vector<16x8xf32> -> vector<16x8xf32>
    %105 = tpu.concatenate %104, %104 in 1 : vector<16x8xf32>, vector<16x8xf32> -> vector<16x16xf32>
    %cst_58 = arith.constant 0.420448214 : f32
    %106 = vector.broadcast %cst_58 : f32 to vector<16x8xf32>
    %107 = arith.mulf %101, %106 : vector<16x8xf32>
    %cst_59 = arith.constant 0.420448214 : f32
    %108 = vector.broadcast %cst_59 : f32 to vector<16x8xf32>
    %109 = arith.mulf %102, %108 : vector<16x8xf32>
    %cst_60 = arith.constant dense<0.000000e+00> : vector<16x16xf32>
    %110 = tpu.matmul %107, %109, %cst_60 {dimension_numbers = #tpu.dot_dimension_numbers<[1], [1], [0], [0], [0, 0, 1, 0], [], []>} : vector<16x8xf32>, vector<16x8xf32>, vector<16x16xf32> -> vector<16x16xf32>
    %111 = arith.addf %110, %105 : vector<16x16xf32>
    %cst_61 = arith.constant -1.000000e+09 : f32
    %112 = vector.broadcast %cst_61 : f32 to vector<16x16xf32>
    %113 = arith.select %2, %112, %111 : vector<16x16xi1>, vector<16x16xf32>
    %cst_62 = arith.constant dense<0xFF800000> : vector<16xf32>
    %114 = vector.multi_reduction <maximumf>, %113, %cst_62 [1] : vector<16x16xf32> to vector<16xf32>
    %115 = vector.shape_cast %114 : vector<16xf32> to vector<16x1xf32>
    %116 = vector.broadcast %115 : vector<16x1xf32> to vector<16x16xf32>
    %117 = arith.subf %113, %116 : vector<16x16xf32>
    %118 = math.exp %117 : vector<16x16xf32>
    %cst_63 = arith.constant dense<0.000000e+00> : vector<16xf32>
    %119 = vector.multi_reduction <add>, %118, %cst_63 [1] : vector<16x16xf32> to vector<16xf32>
    %120 = vector.shape_cast %119 : vector<16xf32> to vector<16x1xf32>
    %121 = tpu.reciprocal %120 {approx = true} : vector<16x1xf32> -> vector<16x1xf32>
    %122 = vector.broadcast %121 : vector<16x1xf32> to vector<16x16xf32>
    %123 = arith.mulf %118, %122 : vector<16x16xf32>
    %cst_64 = arith.constant dense<0.000000e+00> : vector<16x8xf32>
    %124 = tpu.matmul %123, %103, %cst_64 {dimension_numbers = #tpu.dot_dimension_numbers<[1], [0], [0], [1], [0, 0, 1, 1], [], []>} : vector<16x16xf32>, vector<16x8xf32>, vector<16x8xf32> -> vector<16x8xf32>
    %125 = tpu.concatenate %52, %76, %100, %124 in 1 : vector<16x8xf32>, vector<16x8xf32>, vector<16x8xf32>, vector<16x8xf32> -> vector<16x32xf32>
    %126 = vector.extract_strided_slice %125 {offsets = [0, 0], sizes = [8, 32], strides = [1, 1]} : vector<16x32xf32> to vector<8x32xf32>
    %cst_65 = arith.constant dense<0.000000e+00> : vector<8x8xf32>
    %127 = tpu.matmul %4, %126, %cst_65 {dimension_numbers = #tpu.dot_dimension_numbers<[1], [1], [0], [0], [0, 0, 1, 0], [], []>} : vector<8x32xf32>, vector<8x32xf32>, vector<8x8xf32> -> vector<8x8xf32>
    %cst_66 = arith.constant dense<0.000000e+00> : vector<8x8xf32>
    %128 = tpu.matmul %6, %126, %cst_66 {dimension_numbers = #tpu.dot_dimension_numbers<[1], [1], [0], [0], [0, 0, 1, 0], [], []>} : vector<8x32xf32>, vector<8x32xf32>, vector<8x8xf32> -> vector<8x8xf32>
    %cst_67 = arith.constant dense<0.000000e+00> : vector<8x8xf32>
    %129 = tpu.matmul %8, %126, %cst_67 {dimension_numbers = #tpu.dot_dimension_numbers<[1], [1], [0], [0], [0, 0, 1, 0], [], []>} : vector<8x32xf32>, vector<8x32xf32>, vector<8x8xf32> -> vector<8x8xf32>
    %cst_68 = arith.constant dense<0.000000e+00> : vector<8x8xf32>
    %130 = tpu.matmul %10, %126, %cst_68 {dimension_numbers = #tpu.dot_dimension_numbers<[1], [1], [0], [0], [0, 0, 1, 0], [], []>} : vector<8x32xf32>, vector<8x32xf32>, vector<8x8xf32> -> vector<8x8xf32>
    %131 = tpu.concatenate %127, %128, %129, %130 in 1 : vector<8x8xf32>, vector<8x8xf32>, vector<8x8xf32>, vector<8x8xf32> -> vector<8x32xf32>
    %132 = vector.extract_strided_slice %125 {offsets = [8, 0], sizes = [8, 32], strides = [1, 1]} : vector<16x32xf32> to vector<8x32xf32>
    %cst_69 = arith.constant dense<0.000000e+00> : vector<8x8xf32>
    %133 = tpu.matmul %4, %132, %cst_69 {dimension_numbers = #tpu.dot_dimension_numbers<[1], [1], [0], [0], [0, 0, 1, 0], [], []>} : vector<8x32xf32>, vector<8x32xf32>, vector<8x8xf32> -> vector<8x8xf32>
    %cst_70 = arith.constant dense<0.000000e+00> : vector<8x8xf32>
    %134 = tpu.matmul %6, %132, %cst_70 {dimension_numbers = #tpu.dot_dimension_numbers<[1], [1], [0], [0], [0, 0, 1, 0], [], []>} : vector<8x32xf32>, vector<8x32xf32>, vector<8x8xf32> -> vector<8x8xf32>
    %cst_71 = arith.constant dense<0.000000e+00> : vector<8x8xf32>
    %135 = tpu.matmul %8, %132, %cst_71 {dimension_numbers = #tpu.dot_dimension_numbers<[1], [1], [0], [0], [0, 0, 1, 0], [], []>} : vector<8x32xf32>, vector<8x32xf32>, vector<8x8xf32> -> vector<8x8xf32>
    %cst_72 = arith.constant dense<0.000000e+00> : vector<8x8xf32>
    %136 = tpu.matmul %10, %132, %cst_72 {dimension_numbers = #tpu.dot_dimension_numbers<[1], [1], [0], [0], [0, 0, 1, 0], [], []>} : vector<8x32xf32>, vector<8x32xf32>, vector<8x8xf32> -> vector<8x8xf32>
    %137 = tpu.concatenate %133, %134, %135, %136 in 1 : vector<8x8xf32>, vector<8x8xf32>, vector<8x8xf32>, vector<8x8xf32> -> vector<8x32xf32>
    %138 = tpu.concatenate %131, %137 in 0 : vector<8x32xf32>, vector<8x32xf32> -> vector<16x32xf32>
    %c0_73 = arith.constant 0 : index
    %c0_74 = arith.constant 0 : index
    %c0_75 = arith.constant 0 : index
    %139 = vector.load %arg7[%c0_73, %c0_74, %c0_75] : memref<2x32x32xf32, #tpu.memory_space<vmem>>, vector<1x32x32xf32>
    %140 = vector.shape_cast %139 : vector<1x32x32xf32> to vector<32x32xf32>
    %cst_76 = arith.constant dense<0.000000e+00> : vector<16x32xf32>
    %141 = tpu.matmul %138, %140, %cst_76 {dimension_numbers = #tpu.dot_dimension_numbers<[1], [0], [0], [1], [0, 0, 1, 1], [], []>} : vector<16x32xf32>, vector<32x32xf32>, vector<16x32xf32> -> vector<16x32xf32>
    %c0_77 = arith.constant 0 : index
    %c0_78 = arith.constant 0 : index
    %c0_79 = arith.constant 0 : index
    %142 = vector.load %arg8[%c0_77, %c0_78, %c0_79] : memref<2x1x32xf32, #tpu.memory_space<vmem>>, vector<1x1x32xf32>
    %143 = vector.shape_cast %142 : vector<1x1x32xf32> to vector<1x32xf32>
    %144 = vector.broadcast %143 : vector<1x32xf32> to vector<16x32xf32>
    %145 = arith.addf %141, %144 : vector<16x32xf32>
    %c1_80 = arith.constant 1 : index
    %c0_81 = arith.constant 0 : index
    %c0_82 = arith.constant 0 : index
    %146 = vector.load %arg1[%c1_80, %c0_81, %c0_82] : memref<2x16x32xf32, #tpu.memory_space<vmem>>, vector<1x16x32xf32>
    %147 = vector.shape_cast %146 : vector<1x16x32xf32> to vector<16x32xf32>
    %148 = arith.mulf %145, %147 : vector<16x32xf32>
    %c1_83 = arith.constant 1 : index
    %c0_84 = arith.constant 0 : index
    %c0_85 = arith.constant 0 : index
    %149 = vector.load %arg2[%c1_83, %c0_84, %c0_85] : memref<2x16x32xf32, #tpu.memory_space<vmem>>, vector<1x16x32xf32>
    %150 = vector.shape_cast %149 : vector<1x16x32xf32> to vector<16x32xf32>
    %151 = arith.addf %148, %150 : vector<16x32xf32>
    %c1_86 = arith.constant 1 : index
    %c0_87 = arith.constant 0 : index
    %c0_88 = arith.constant 0 : index
    %152 = vector.load %arg3[%c1_86, %c0_87, %c0_88] : memref<2x32x32xf32, #tpu.memory_space<vmem>>, vector<1x32x32xf32>
    %153 = vector.shape_cast %152 : vector<1x32x32xf32> to vector<32x32xf32>
    %cst_89 = arith.constant dense<0.000000e+00> : vector<16x32xf32>
    %154 = tpu.matmul %151, %153, %cst_89 {dimension_numbers = #tpu.dot_dimension_numbers<[1], [0], [0], [1], [0, 0, 1, 1], [], []>} : vector<16x32xf32>, vector<32x32xf32>, vector<16x32xf32> -> vector<16x32xf32>
    %c1_90 = arith.constant 1 : index
    %c0_91 = arith.constant 0 : index
    %c0_92 = arith.constant 0 : index
    %155 = vector.load %arg4[%c1_90, %c0_91, %c0_92] : memref<2x32x32xf32, #tpu.memory_space<vmem>>, vector<1x32x32xf32>
    %156 = vector.shape_cast %155 : vector<1x32x32xf32> to vector<32x32xf32>
    %cst_93 = arith.constant dense<0.000000e+00> : vector<16x32xf32>
    %157 = tpu.matmul %151, %156, %cst_93 {dimension_numbers = #tpu.dot_dimension_numbers<[1], [0], [0], [1], [0, 0, 1, 1], [], []>} : vector<16x32xf32>, vector<32x32xf32>, vector<16x32xf32> -> vector<16x32xf32>
    %c1_94 = arith.constant 1 : index
    %c0_95 = arith.constant 0 : index
    %c0_96 = arith.constant 0 : index
    %158 = vector.load %arg5[%c1_94, %c0_95, %c0_96] : memref<2x32x32xf32, #tpu.memory_space<vmem>>, vector<1x32x32xf32>
    %159 = vector.shape_cast %158 : vector<1x32x32xf32> to vector<32x32xf32>
    %cst_97 = arith.constant dense<0.000000e+00> : vector<16x32xf32>
    %160 = tpu.matmul %151, %159, %cst_97 {dimension_numbers = #tpu.dot_dimension_numbers<[1], [0], [0], [1], [0, 0, 1, 1], [], []>} : vector<16x32xf32>, vector<32x32xf32>, vector<16x32xf32> -> vector<16x32xf32>
    %c1_98 = arith.constant 1 : index
    %c0_99 = arith.constant 0 : index
    %c0_100 = arith.constant 0 : index
    %161 = vector.load %arg6[%c1_98, %c0_99, %c0_100] : memref<2x8x8xf32, #tpu.memory_space<vmem>>, vector<1x8x8xf32>
    %162 = vector.shape_cast %161 : vector<1x8x8xf32> to vector<8x8xf32>
    %163 = vector.extract_strided_slice %154 {offsets = [0, 0], sizes = [16, 8], strides = [1, 1]} : vector<16x32xf32> to vector<16x8xf32>
    %164 = vector.extract_strided_slice %157 {offsets = [0, 0], sizes = [16, 8], strides = [1, 1]} : vector<16x32xf32> to vector<16x8xf32>
    %165 = vector.extract_strided_slice %160 {offsets = [0, 0], sizes = [16, 8], strides = [1, 1]} : vector<16x32xf32> to vector<16x8xf32>
    %cst_101 = arith.constant dense<0.000000e+00> : vector<16x8xf32>
    %166 = tpu.matmul %163, %162, %cst_101 {dimension_numbers = #tpu.dot_dimension_numbers<[1], [0], [0], [1], [0, 0, 1, 1], [], []>} : vector<16x8xf32>, vector<8x8xf32>, vector<16x8xf32> -> vector<16x8xf32>
    %167 = tpu.concatenate %166, %166 in 1 : vector<16x8xf32>, vector<16x8xf32> -> vector<16x16xf32>
    %cst_102 = arith.constant 0.420448214 : f32
    %168 = vector.broadcast %cst_102 : f32 to vector<16x8xf32>
    %169 = arith.mulf %163, %168 : vector<16x8xf32>
    %cst_103 = arith.constant 0.420448214 : f32
    %170 = vector.broadcast %cst_103 : f32 to vector<16x8xf32>
    %171 = arith.mulf %164, %170 : vector<16x8xf32>
    %cst_104 = arith.constant dense<0.000000e+00> : vector<16x16xf32>
    %172 = tpu.matmul %169, %171, %cst_104 {dimension_numbers = #tpu.dot_dimension_numbers<[1], [1], [0], [0], [0, 0, 1, 0], [], []>} : vector<16x8xf32>, vector<16x8xf32>, vector<16x16xf32> -> vector<16x16xf32>
    %173 = arith.addf %172, %167 : vector<16x16xf32>
    %cst_105 = arith.constant -1.000000e+09 : f32
    %174 = vector.broadcast %cst_105 : f32 to vector<16x16xf32>
    %175 = arith.select %2, %174, %173 : vector<16x16xi1>, vector<16x16xf32>
    %cst_106 = arith.constant dense<0xFF800000> : vector<16xf32>
    %176 = vector.multi_reduction <maximumf>, %175, %cst_106 [1] : vector<16x16xf32> to vector<16xf32>
    %177 = vector.shape_cast %176 : vector<16xf32> to vector<16x1xf32>
    %178 = vector.broadcast %177 : vector<16x1xf32> to vector<16x16xf32>
    %179 = arith.subf %175, %178 : vector<16x16xf32>
    %180 = math.exp %179 : vector<16x16xf32>
    %cst_107 = arith.constant dense<0.000000e+00> : vector<16xf32>
    %181 = vector.multi_reduction <add>, %180, %cst_107 [1] : vector<16x16xf32> to vector<16xf32>
    %182 = vector.shape_cast %181 : vector<16xf32> to vector<16x1xf32>
    %183 = tpu.reciprocal %182 {approx = true} : vector<16x1xf32> -> vector<16x1xf32>
    %184 = vector.broadcast %183 : vector<16x1xf32> to vector<16x16xf32>
    %185 = arith.mulf %180, %184 : vector<16x16xf32>
    %cst_108 = arith.constant dense<0.000000e+00> : vector<16x8xf32>
    %186 = tpu.matmul %185, %165, %cst_108 {dimension_numbers = #tpu.dot_dimension_numbers<[1], [0], [0], [1], [0, 0, 1, 1], [], []>} : vector<16x16xf32>, vector<16x8xf32>, vector<16x8xf32> -> vector<16x8xf32>
    %187 = vector.extract_strided_slice %154 {offsets = [0, 8], sizes = [16, 8], strides = [1, 1]} : vector<16x32xf32> to vector<16x8xf32>
    %188 = vector.extract_strided_slice %157 {offsets = [0, 8], sizes = [16, 8], strides = [1, 1]} : vector<16x32xf32> to vector<16x8xf32>
    %189 = vector.extract_strided_slice %160 {offsets = [0, 8], sizes = [16, 8], strides = [1, 1]} : vector<16x32xf32> to vector<16x8xf32>
    %cst_109 = arith.constant dense<0.000000e+00> : vector<16x8xf32>
    %190 = tpu.matmul %187, %162, %cst_109 {dimension_numbers = #tpu.dot_dimension_numbers<[1], [0], [0], [1], [0, 0, 1, 1], [], []>} : vector<16x8xf32>, vector<8x8xf32>, vector<16x8xf32> -> vector<16x8xf32>
    %191 = tpu.concatenate %190, %190 in 1 : vector<16x8xf32>, vector<16x8xf32> -> vector<16x16xf32>
    %cst_110 = arith.constant 0.420448214 : f32
    %192 = vector.broadcast %cst_110 : f32 to vector<16x8xf32>
    %193 = arith.mulf %187, %192 : vector<16x8xf32>
    %cst_111 = arith.constant 0.420448214 : f32
    %194 = vector.broadcast %cst_111 : f32 to vector<16x8xf32>
    %195 = arith.mulf %188, %194 : vector<16x8xf32>
    %cst_112 = arith.constant dense<0.000000e+00> : vector<16x16xf32>
    %196 = tpu.matmul %193, %195, %cst_112 {dimension_numbers = #tpu.dot_dimension_numbers<[1], [1], [0], [0], [0, 0, 1, 0], [], []>} : vector<16x8xf32>, vector<16x8xf32>, vector<16x16xf32> -> vector<16x16xf32>
    %197 = arith.addf %196, %191 : vector<16x16xf32>
    %cst_113 = arith.constant -1.000000e+09 : f32
    %198 = vector.broadcast %cst_113 : f32 to vector<16x16xf32>
    %199 = arith.select %2, %198, %197 : vector<16x16xi1>, vector<16x16xf32>
    %cst_114 = arith.constant dense<0xFF800000> : vector<16xf32>
    %200 = vector.multi_reduction <maximumf>, %199, %cst_114 [1] : vector<16x16xf32> to vector<16xf32>
    %201 = vector.shape_cast %200 : vector<16xf32> to vector<16x1xf32>
    %202 = vector.broadcast %201 : vector<16x1xf32> to vector<16x16xf32>
    %203 = arith.subf %199, %202 : vector<16x16xf32>
    %204 = math.exp %203 : vector<16x16xf32>
    %cst_115 = arith.constant dense<0.000000e+00> : vector<16xf32>
    %205 = vector.multi_reduction <add>, %204, %cst_115 [1] : vector<16x16xf32> to vector<16xf32>
    %206 = vector.shape_cast %205 : vector<16xf32> to vector<16x1xf32>
    %207 = tpu.reciprocal %206 {approx = true} : vector<16x1xf32> -> vector<16x1xf32>
    %208 = vector.broadcast %207 : vector<16x1xf32> to vector<16x16xf32>
    %209 = arith.mulf %204, %208 : vector<16x16xf32>
    %cst_116 = arith.constant dense<0.000000e+00> : vector<16x8xf32>
    %210 = tpu.matmul %209, %189, %cst_116 {dimension_numbers = #tpu.dot_dimension_numbers<[1], [0], [0], [1], [0, 0, 1, 1], [], []>} : vector<16x16xf32>, vector<16x8xf32>, vector<16x8xf32> -> vector<16x8xf32>
    %211 = vector.extract_strided_slice %154 {offsets = [0, 16], sizes = [16, 8], strides = [1, 1]} : vector<16x32xf32> to vector<16x8xf32>
    %212 = vector.extract_strided_slice %157 {offsets = [0, 16], sizes = [16, 8], strides = [1, 1]} : vector<16x32xf32> to vector<16x8xf32>
    %213 = vector.extract_strided_slice %160 {offsets = [0, 16], sizes = [16, 8], strides = [1, 1]} : vector<16x32xf32> to vector<16x8xf32>
    %cst_117 = arith.constant dense<0.000000e+00> : vector<16x8xf32>
    %214 = tpu.matmul %211, %162, %cst_117 {dimension_numbers = #tpu.dot_dimension_numbers<[1], [0], [0], [1], [0, 0, 1, 1], [], []>} : vector<16x8xf32>, vector<8x8xf32>, vector<16x8xf32> -> vector<16x8xf32>
    %215 = tpu.concatenate %214, %214 in 1 : vector<16x8xf32>, vector<16x8xf32> -> vector<16x16xf32>
    %cst_118 = arith.constant 0.420448214 : f32
    %216 = vector.broadcast %cst_118 : f32 to vector<16x8xf32>
    %217 = arith.mulf %211, %216 : vector<16x8xf32>
    %cst_119 = arith.constant 0.420448214 : f32
    %218 = vector.broadcast %cst_119 : f32 to vector<16x8xf32>
    %219 = arith.mulf %212, %218 : vector<16x8xf32>
    %cst_120 = arith.constant dense<0.000000e+00> : vector<16x16xf32>
    %220 = tpu.matmul %217, %219, %cst_120 {dimension_numbers = #tpu.dot_dimension_numbers<[1], [1], [0], [0], [0, 0, 1, 0], [], []>} : vector<16x8xf32>, vector<16x8xf32>, vector<16x16xf32> -> vector<16x16xf32>
    %221 = arith.addf %220, %215 : vector<16x16xf32>
    %cst_121 = arith.constant -1.000000e+09 : f32
    %222 = vector.broadcast %cst_121 : f32 to vector<16x16xf32>
    %223 = arith.select %2, %222, %221 : vector<16x16xi1>, vector<16x16xf32>
    %cst_122 = arith.constant dense<0xFF800000> : vector<16xf32>
    %224 = vector.multi_reduction <maximumf>, %223, %cst_122 [1] : vector<16x16xf32> to vector<16xf32>
    %225 = vector.shape_cast %224 : vector<16xf32> to vector<16x1xf32>
    %226 = vector.broadcast %225 : vector<16x1xf32> to vector<16x16xf32>
    %227 = arith.subf %223, %226 : vector<16x16xf32>
    %228 = math.exp %227 : vector<16x16xf32>
    %cst_123 = arith.constant dense<0.000000e+00> : vector<16xf32>
    %229 = vector.multi_reduction <add>, %228, %cst_123 [1] : vector<16x16xf32> to vector<16xf32>
    %230 = vector.shape_cast %229 : vector<16xf32> to vector<16x1xf32>
    %231 = tpu.reciprocal %230 {approx = true} : vector<16x1xf32> -> vector<16x1xf32>
    %232 = vector.broadcast %231 : vector<16x1xf32> to vector<16x16xf32>
    %233 = arith.mulf %228, %232 : vector<16x16xf32>
    %cst_124 = arith.constant dense<0.000000e+00> : vector<16x8xf32>
    %234 = tpu.matmul %233, %213, %cst_124 {dimension_numbers = #tpu.dot_dimension_numbers<[1], [0], [0], [1], [0, 0, 1, 1], [], []>} : vector<16x16xf32>, vector<16x8xf32>, vector<16x8xf32> -> vector<16x8xf32>
    %235 = vector.extract_strided_slice %154 {offsets = [0, 24], sizes = [16, 8], strides = [1, 1]} : vector<16x32xf32> to vector<16x8xf32>
    %236 = vector.extract_strided_slice %157 {offsets = [0, 24], sizes = [16, 8], strides = [1, 1]} : vector<16x32xf32> to vector<16x8xf32>
    %237 = vector.extract_strided_slice %160 {offsets = [0, 24], sizes = [16, 8], strides = [1, 1]} : vector<16x32xf32> to vector<16x8xf32>
    %cst_125 = arith.constant dense<0.000000e+00> : vector<16x8xf32>
    %238 = tpu.matmul %235, %162, %cst_125 {dimension_numbers = #tpu.dot_dimension_numbers<[1], [0], [0], [1], [0, 0, 1, 1], [], []>} : vector<16x8xf32>, vector<8x8xf32>, vector<16x8xf32> -> vector<16x8xf32>
    %239 = tpu.concatenate %238, %238 in 1 : vector<16x8xf32>, vector<16x8xf32> -> vector<16x16xf32>
    %cst_126 = arith.constant 0.420448214 : f32
    %240 = vector.broadcast %cst_126 : f32 to vector<16x8xf32>
    %241 = arith.mulf %235, %240 : vector<16x8xf32>
    %cst_127 = arith.constant 0.420448214 : f32
    %242 = vector.broadcast %cst_127 : f32 to vector<16x8xf32>
    %243 = arith.mulf %236, %242 : vector<16x8xf32>
    %cst_128 = arith.constant dense<0.000000e+00> : vector<16x16xf32>
    %244 = tpu.matmul %241, %243, %cst_128 {dimension_numbers = #tpu.dot_dimension_numbers<[1], [1], [0], [0], [0, 0, 1, 0], [], []>} : vector<16x8xf32>, vector<16x8xf32>, vector<16x16xf32> -> vector<16x16xf32>
    %245 = arith.addf %244, %239 : vector<16x16xf32>
    %cst_129 = arith.constant -1.000000e+09 : f32
    %246 = vector.broadcast %cst_129 : f32 to vector<16x16xf32>
    %247 = arith.select %2, %246, %245 : vector<16x16xi1>, vector<16x16xf32>
    %cst_130 = arith.constant dense<0xFF800000> : vector<16xf32>
    %248 = vector.multi_reduction <maximumf>, %247, %cst_130 [1] : vector<16x16xf32> to vector<16xf32>
    %249 = vector.shape_cast %248 : vector<16xf32> to vector<16x1xf32>
    %250 = vector.broadcast %249 : vector<16x1xf32> to vector<16x16xf32>
    %251 = arith.subf %247, %250 : vector<16x16xf32>
    %252 = math.exp %251 : vector<16x16xf32>
    %cst_131 = arith.constant dense<0.000000e+00> : vector<16xf32>
    %253 = vector.multi_reduction <add>, %252, %cst_131 [1] : vector<16x16xf32> to vector<16xf32>
    %254 = vector.shape_cast %253 : vector<16xf32> to vector<16x1xf32>
    %255 = tpu.reciprocal %254 {approx = true} : vector<16x1xf32> -> vector<16x1xf32>
    %256 = vector.broadcast %255 : vector<16x1xf32> to vector<16x16xf32>
    %257 = arith.mulf %252, %256 : vector<16x16xf32>
    %cst_132 = arith.constant dense<0.000000e+00> : vector<16x8xf32>
    %258 = tpu.matmul %257, %237, %cst_132 {dimension_numbers = #tpu.dot_dimension_numbers<[1], [0], [0], [1], [0, 0, 1, 1], [], []>} : vector<16x16xf32>, vector<16x8xf32>, vector<16x8xf32> -> vector<16x8xf32>
    %259 = tpu.concatenate %186, %210, %234, %258 in 1 : vector<16x8xf32>, vector<16x8xf32>, vector<16x8xf32>, vector<16x8xf32> -> vector<16x32xf32>
    %260 = vector.extract_strided_slice %259 {offsets = [0, 0], sizes = [8, 32], strides = [1, 1]} : vector<16x32xf32> to vector<8x32xf32>
    %cst_133 = arith.constant dense<0.000000e+00> : vector<8x8xf32>
    %261 = tpu.matmul %4, %260, %cst_133 {dimension_numbers = #tpu.dot_dimension_numbers<[1], [1], [0], [0], [0, 0, 1, 0], [], []>} : vector<8x32xf32>, vector<8x32xf32>, vector<8x8xf32> -> vector<8x8xf32>
    %cst_134 = arith.constant dense<0.000000e+00> : vector<8x8xf32>
    %262 = tpu.matmul %6, %260, %cst_134 {dimension_numbers = #tpu.dot_dimension_numbers<[1], [1], [0], [0], [0, 0, 1, 0], [], []>} : vector<8x32xf32>, vector<8x32xf32>, vector<8x8xf32> -> vector<8x8xf32>
    %cst_135 = arith.constant dense<0.000000e+00> : vector<8x8xf32>
    %263 = tpu.matmul %8, %260, %cst_135 {dimension_numbers = #tpu.dot_dimension_numbers<[1], [1], [0], [0], [0, 0, 1, 0], [], []>} : vector<8x32xf32>, vector<8x32xf32>, vector<8x8xf32> -> vector<8x8xf32>
    %cst_136 = arith.constant dense<0.000000e+00> : vector<8x8xf32>
    %264 = tpu.matmul %10, %260, %cst_136 {dimension_numbers = #tpu.dot_dimension_numbers<[1], [1], [0], [0], [0, 0, 1, 0], [], []>} : vector<8x32xf32>, vector<8x32xf32>, vector<8x8xf32> -> vector<8x8xf32>
    %265 = tpu.concatenate %261, %262, %263, %264 in 1 : vector<8x8xf32>, vector<8x8xf32>, vector<8x8xf32>, vector<8x8xf32> -> vector<8x32xf32>
    %266 = vector.extract_strided_slice %259 {offsets = [8, 0], sizes = [8, 32], strides = [1, 1]} : vector<16x32xf32> to vector<8x32xf32>
    %cst_137 = arith.constant dense<0.000000e+00> : vector<8x8xf32>
    %267 = tpu.matmul %4, %266, %cst_137 {dimension_numbers = #tpu.dot_dimension_numbers<[1], [1], [0], [0], [0, 0, 1, 0], [], []>} : vector<8x32xf32>, vector<8x32xf32>, vector<8x8xf32> -> vector<8x8xf32>
    %cst_138 = arith.constant dense<0.000000e+00> : vector<8x8xf32>
    %268 = tpu.matmul %6, %266, %cst_138 {dimension_numbers = #tpu.dot_dimension_numbers<[1], [1], [0], [0], [0, 0, 1, 0], [], []>} : vector<8x32xf32>, vector<8x32xf32>, vector<8x8xf32> -> vector<8x8xf32>
    %cst_139 = arith.constant dense<0.000000e+00> : vector<8x8xf32>
    %269 = tpu.matmul %8, %266, %cst_139 {dimension_numbers = #tpu.dot_dimension_numbers<[1], [1], [0], [0], [0, 0, 1, 0], [], []>} : vector<8x32xf32>, vector<8x32xf32>, vector<8x8xf32> -> vector<8x8xf32>
    %cst_140 = arith.constant dense<0.000000e+00> : vector<8x8xf32>
    %270 = tpu.matmul %10, %266, %cst_140 {dimension_numbers = #tpu.dot_dimension_numbers<[1], [1], [0], [0], [0, 0, 1, 0], [], []>} : vector<8x32xf32>, vector<8x32xf32>, vector<8x8xf32> -> vector<8x8xf32>
    %271 = tpu.concatenate %267, %268, %269, %270 in 1 : vector<8x8xf32>, vector<8x8xf32>, vector<8x8xf32>, vector<8x8xf32> -> vector<8x32xf32>
    %272 = tpu.concatenate %265, %271 in 0 : vector<8x32xf32>, vector<8x32xf32> -> vector<16x32xf32>
    %c1_141 = arith.constant 1 : index
    %c0_142 = arith.constant 0 : index
    %c0_143 = arith.constant 0 : index
    %273 = vector.load %arg7[%c1_141, %c0_142, %c0_143] : memref<2x32x32xf32, #tpu.memory_space<vmem>>, vector<1x32x32xf32>
    %274 = vector.shape_cast %273 : vector<1x32x32xf32> to vector<32x32xf32>
    %cst_144 = arith.constant dense<0.000000e+00> : vector<16x32xf32>
    %275 = tpu.matmul %272, %274, %cst_144 {dimension_numbers = #tpu.dot_dimension_numbers<[1], [0], [0], [1], [0, 0, 1, 1], [], []>} : vector<16x32xf32>, vector<32x32xf32>, vector<16x32xf32> -> vector<16x32xf32>
    %c1_145 = arith.constant 1 : index
    %c0_146 = arith.constant 0 : index
    %c0_147 = arith.constant 0 : index
    %276 = vector.load %arg8[%c1_145, %c0_146, %c0_147] : memref<2x1x32xf32, #tpu.memory_space<vmem>>, vector<1x1x32xf32>
    %277 = vector.shape_cast %276 : vector<1x1x32xf32> to vector<1x32xf32>
    %278 = vector.broadcast %277 : vector<1x32xf32> to vector<16x32xf32>
    %279 = arith.addf %275, %278 : vector<16x32xf32>
    %c0_148 = arith.constant 0 : index
    %c0_149 = arith.constant 0 : index
    %280 = vector.load %arg11[%c0_148, %c0_149] : memref<32x128xf32, #tpu.memory_space<vmem>>, vector<32x128xf32>
    %cst_150 = arith.constant dense<0.000000e+00> : vector<16x128xf32>
    %281 = tpu.matmul %279, %280, %cst_150 {dimension_numbers = #tpu.dot_dimension_numbers<[1], [0], [0], [1], [0, 0, 1, 1], [], []>} : vector<16x32xf32>, vector<32x128xf32>, vector<16x128xf32> -> vector<16x128xf32>
    %c0_151 = arith.constant 0 : index
    %c0_152 = arith.constant 0 : index
    %282 = vector.load %arg12[%c0_151, %c0_152] : memref<1x128xf32, #tpu.memory_space<vmem>>, vector<1x128xf32>
    %283 = vector.broadcast %282 : vector<1x128xf32> to vector<16x128xf32>
    %284 = arith.addf %281, %283 : vector<16x128xf32>
    %c0_153 = arith.constant 0 : index
    %c0_154 = arith.constant 0 : index
    %285 = vector.load %arg13[%c0_153, %c0_154] : memref<16x128xf32, #tpu.memory_space<vmem>>, vector<16x128xf32>
    tpu.vector_store %arg13[%c0_153, %c0_154], %284 {strides = array<i32>} : memref<16x128xf32, #tpu.memory_space<vmem>>, vector<16x128xf32>,
    return
  }
}

</mosaic_0001>

<bundles_post_ra>
// kernel: tpu_custom_call.1
= control target key start
LH: loop header
LB: loop body
LE: loop exit
PB: predicated region body
PF: predicated region fallthrough
CT: control target
= control target key end

     0   :  { %18 = vsyncpa [#allocation3], 0  ;;  %s6624_s0 = inlined_call_operand.hbm [shape: f32[16,32], index: 0, kind: input, shape index: {}]   ;;  %s6625_s1 = inlined_call_operand.hbm [shape: f32[2,16,32], index: 1, kind: input, shape index: {}]   ;;  %s6626_s2 = inlined_call_operand.hbm [shape: f32[2,16,32], index: 2, kind: input, shape index: {}]   ;;  %s6627_s3 = inlined_call_operand.hbm [shape: f32[2,32,32], index: 3, kind: input, shape index: {}]   ;;  %s6628_s4 = inlined_call_operand.hbm [shape: f32[2,32,32], index: 4, kind: input, shape index: {}]   ;;  %s6629_s5 = inlined_call_operand.hbm [shape: f32[2,32,32], index: 5, kind: input, shape index: {}]   ;;  %s6630_s6 = inlined_call_operand.hbm [shape: f32[2,8,8], index: 6, kind: input, shape index: {}]   ;;  %s6631_s7 = inlined_call_operand.hbm [shape: f32[2,32,32], index: 7, kind: input, shape index: {}]   ;;  %s6632_s8 = inlined_call_operand.vmem [shape: f32[2,1,32], index: 8, kind: input, shape index: {}]   ;;  %s6633_s9 = inlined_call_operand.vmem [shape: f32[4,8,32], index: 9, kind: input, shape index: {}]   ;;  %s6634_s10 = inlined_call_operand.hbm [shape: f32[16,16], index: 10, kind: input, shape index: {}]   ;;  %s6635_s11 = inlined_call_operand.hbm [shape: f32[32,128], index: 11, kind: input, shape index: {}]   ;;  %s6636_s12 = inlined_call_operand.vmem [shape: f32[1,128], index: 12, kind: input, shape index: {}]   ;;  %s6637_s13 = inlined_call_operand.hbm [shape: f32[16,128], index: 13, kind: output, shape index: {}]  }
   0x1   :  { %19 = vsyncpa [#allocation6], 0 }
   0x2   :  { %20 = vsyncpa [#allocation9], 0 }
   0x3   :  { %21 = vsyncpa [#allocation12], 0 }
   0x4   :  { %22 = vsyncpa [#allocation15], 0 }
   0x5   :  { %23 = vsyncpa [#allocation18], 0 }
   0x6   :  { %24 = vsyncpa [#allocation4], 0  ;;  %s5800_s25 = smov [#allocation5]   ;;  %s5801_s27 = smov [#allocation8]  }
   0x7   :  { %s42_s26 = sshll.u32 %s5800_s25, 4  ;;  %s66_s28 = sshll.u32 %s5801_s27, 4  ;;  %s43_s26 = int_to_ptr.vmem [resolvable:$true] %s42_s26  ;;  %s5890_s28 = int_to_ptr.vmem [resolvable:$true] %s66_s28 }
   0x8   :  { %s5544_s14 = scalar_lea.hbm %s6625_s1, 512 }
   0x9   :  { %p5545_p0 = scmp.ne.s32.totalorder %s6625_s1, %s5544_s14  ;;  %p5548_p1 = scmp.lt.u32.totalorder %s5544_s14, %s6625_s1 }
   0xb   :  { %p5550_p2 = pnand %p5548_p1, %p5545_p0 }
   0xd   :  { %5553 = shalt.err (!%p5550_p2)
}
   0xe   :  { %s5554_s19 = scalar_lea.vmem %s43_s26, 512  ;;  %p5559_p4 = scmp.lt.s32.totalorder %s43_s26, %s43_s26 }
   0xf   :  { %p5555_p3 = scmp.ne.s32.totalorder %s43_s26, %s5554_s19  ;;  %p5560_p5 = scmp.lt.s32.totalorder %s5554_s19, %s5554_s19 }
  0x11   :  { %p5561_p6 = por %p5560_p5, %p5559_p4 }
  0x13   :  { %p5562_p7 = pnand %p5561_p6, %p5555_p3 }
  0x15   :  { %5565 = shalt.err (!%p5562_p7)
}
  0x16   :  { %s5802_s20 = smov 128   ;;  %s5803_s21 = smov 8  }
  0x17   :  { %48 = dma.hbm_to_vmem [thread:$0]  %s6625_s1, 512, %s43_s26, [#allocation6], %s5802_s20, %s5802_s20, %s5803_s21  }
  0x18   :  { %s5566_s27 = scalar_lea.hbm %s6627_s3, 1024 }
  0x19   :  { %p5567_p8 = scmp.ne.s32.totalorder %s6627_s3, %s5566_s27  ;;  %p5570_p9 = scmp.lt.u32.totalorder %s5566_s27, %s6627_s3 }
  0x1b   :  { %p5572_p10 = pnand %p5570_p9, %p5567_p8 }
  0x1d   :  { %5575 = shalt.err (!%p5572_p10)
}
  0x1e   :  { %s5576_s16 = scalar_lea.vmem %s5890_s28, 1024  ;;  %p5581_p12 = scmp.lt.s32.totalorder %s5890_s28, %s5890_s28 }
  0x1f   :  { %p5577_p11 = scmp.ne.s32.totalorder %s5890_s28, %s5576_s16  ;;  %p5582_p13 = scmp.lt.s32.totalorder %s5576_s16, %s5576_s16 }
  0x21   :  { %p5583_p0 = por %p5582_p13, %p5581_p12 }
  0x23   :  { %p5584_p1 = pnand %p5583_p0, %p5577_p11 }
  0x25   :  { %5587 = shalt.err (!%p5584_p1)
}
  0x26   :  { %72 = dma.hbm_to_vmem [thread:$0]  %s6627_s3, 1024, %s5890_s28, [#allocation9], %s5802_s20, %s5802_s20, %s5803_s21  }
  0x27   :  { %s5804_s17 = smov [#allocation11]   ;;  %s5805_s19 = smov [#allocation14]  }
  0x28   :  { %s90_s18 = sshll.u32 %s5804_s17, 4  ;;  %s114_s22 = sshll.u32 %s5805_s19, 4  ;;  %s91_s18 = int_to_ptr.vmem [resolvable:$true] %s90_s18  ;;  %s5927_s22 = int_to_ptr.vmem [resolvable:$true] %s114_s22 }
  0x29   :  { %s5588_s25 = scalar_lea.hbm %s6629_s5, 1024 }
  0x2a   :  { %p5589_p2 = scmp.ne.s32.totalorder %s6629_s5, %s5588_s25  ;;  %p5592_p3 = scmp.lt.u32.totalorder %s5588_s25, %s6629_s5 }
  0x2c   :  { %p5594_p4 = pnand %p5592_p3, %p5589_p2 }
  0x2e   :  { %5597 = shalt.err (!%p5594_p4)
}
  0x2f   :  { %s5598_s3 = scalar_lea.vmem %s91_s18, 1024  ;;  %p5603_p6 = scmp.lt.s32.totalorder %s91_s18, %s91_s18 }
  0x30   :  { %p5599_p5 = scmp.ne.s32.totalorder %s91_s18, %s5598_s3  ;;  %p5604_p7 = scmp.lt.s32.totalorder %s5598_s3, %s5598_s3 }
  0x32   :  { %p5605_p8 = por %p5604_p7, %p5603_p6 }
  0x34   :  { %p5606_p9 = pnand %p5605_p8, %p5599_p5 }
  0x36   :  { %5609 = shalt.err (!%p5606_p9)
}
  0x37   :  { %96 = dma.hbm_to_vmem [thread:$0]  %s6629_s5, 1024, %s91_s18, [#allocation12], %s5802_s20, %s5802_s20, %s5803_s21  }
  0x38   :  { %s5610_s26 = scalar_lea.hbm %s6631_s7, 1024 }
  0x39   :  { %p5611_p10 = scmp.ne.s32.totalorder %s6631_s7, %s5610_s26  ;;  %p5614_p11 = scmp.lt.u32.totalorder %s5610_s26, %s6631_s7 }
  0x3b   :  { %p5616_p12 = pnand %p5614_p11, %p5611_p10 }
  0x3d   :  { %5619 = shalt.err (!%p5616_p12)
}
  0x3e   :  { %s5620_s25 = scalar_lea.vmem %s5927_s22, 1024  ;;  %p5625_p0 = scmp.lt.s32.totalorder %s5927_s22, %s5927_s22 }
  0x3f   :  { %p5621_p13 = scmp.ne.s32.totalorder %s5927_s22, %s5620_s25  ;;  %p5626_p1 = scmp.lt.s32.totalorder %s5620_s25, %s5620_s25 }
  0x41   :  { %p5627_p2 = por %p5626_p1, %p5625_p0 }
  0x43   :  { %p5628_p3 = pnand %p5627_p2, %p5621_p13 }
  0x45   :  { %5631 = shalt.err (!%p5628_p3)
}
  0x46   :  { %120 = dma.hbm_to_vmem [thread:$0]  %s6631_s7, 1024, %s5927_s22, [#allocation15], %s5802_s20, %s5802_s20, %s5803_s21  }
  0x47   :  { %s5806_s27 = smov [#allocation2]   ;;  %s5807_s30 = smov [#allocation7]  }
  0x48   :  { %s30_s29 = sshll.u32 %s5806_s27, 4  ;;  %s54_s14 = sshll.u32 %s5807_s30, 4  ;;  %s31_s29 = int_to_ptr.vmem [resolvable:$true] %s30_s29  ;;  %s5964_s14 = int_to_ptr.vmem [resolvable:$true] %s54_s14 }
  0x49   :  { %s5632_s15 = scalar_lea.hbm %s6624_s0, 256 }
  0x4a   :  { %p5633_p4 = scmp.ne.s32.totalorder %s6624_s0, %s5632_s15  ;;  %p5636_p5 = scmp.lt.u32.totalorder %s5632_s15, %s6624_s0 }
  0x4c   :  { %p5638_p6 = pnand %p5636_p5, %p5633_p4 }
  0x4e   :  { %5641 = shalt.err (!%p5638_p6)
}
  0x4f   :  { %s5642_s7 = scalar_lea.vmem %s31_s29, 256  ;;  %p5647_p8 = scmp.lt.s32.totalorder %s31_s29, %s31_s29 }
  0x50   :  { %p5643_p7 = scmp.ne.s32.totalorder %s31_s29, %s5642_s7  ;;  %p5648_p9 = scmp.lt.s32.totalorder %s5642_s7, %s5642_s7 }
  0x52   :  { %p5649_p10 = por %p5648_p9, %p5647_p8 }
  0x54   :  { %p5650_p11 = pnand %p5649_p10, %p5643_p7 }
  0x56   :  { %5653 = shalt.err (!%p5650_p11)
}
  0x57   :  { %36 = dma.hbm_to_vmem [thread:$0]  %s6624_s0, 256, %s31_s29, [#allocation3], %s5802_s20, %s5802_s20, %s5803_s21  }
  0x58   :  { %s5654_s25 = scalar_lea.hbm %s6626_s2, 512 }
  0x59   :  { %p5655_p12 = scmp.ne.s32.totalorder %s6626_s2, %s5654_s25  ;;  %p5658_p13 = scmp.lt.u32.totalorder %s5654_s25, %s6626_s2 }
  0x5b   :  { %p5660_p0 = pnand %p5658_p13, %p5655_p12 }
  0x5d   :  { %5663 = shalt.err (!%p5660_p0)
}
  0x5e   :  { %s5664_s3 = scalar_lea.vmem %s5964_s14, 512  ;;  %p5669_p2 = scmp.lt.s32.totalorder %s5964_s14, %s5964_s14 }
  0x5f   :  { %p5665_p1 = scmp.ne.s32.totalorder %s5964_s14, %s5664_s3  ;;  %p5670_p3 = scmp.lt.s32.totalorder %s5664_s3, %s5664_s3 }
  0x61   :  { %p5671_p4 = por %p5670_p3, %p5669_p2 }
  0x63   :  { %p5672_p5 = pnand %p5671_p4, %p5665_p1 }
  0x65   :  { %5675 = shalt.err (!%p5672_p5)
}
  0x66   :  { %60 = dma.hbm_to_vmem [thread:$0]  %s6626_s2, 512, %s5964_s14, [#allocation6], %s5802_s20, %s5802_s20, %s5803_s21  }
  0x67   :  { %s5808_s28 = smov [#allocation10]   ;;  %s5809_s16 = smov [#allocation13]  }
  0x68   :  { %s78_s15 = sshll.u32 %s5808_s28, 4  ;;  %s102_s1 = sshll.u32 %s5809_s16, 4  ;;  %s79_s15 = int_to_ptr.vmem [resolvable:$true] %s78_s15  ;;  %s6001_s1 = int_to_ptr.vmem [resolvable:$true] %s102_s1 }
  0x69   :  { %s5676_s7 = scalar_lea.hbm %s6628_s4, 1024 }
  0x6a   :  { %p5677_p6 = scmp.ne.s32.totalorder %s6628_s4, %s5676_s7  ;;  %p5680_p7 = scmp.lt.u32.totalorder %s5676_s7, %s6628_s4 }
  0x6c   :  { %p5682_p8 = pnand %p5680_p7, %p5677_p6 }
  0x6e   :  { %5685 = shalt.err (!%p5682_p8)
}
  0x6f   :  { %s5686_s2 = scalar_lea.vmem %s79_s15, 1024  ;;  %p5691_p10 = scmp.lt.s32.totalorder %s79_s15, %s79_s15 }
  0x70   :  { %p5687_p9 = scmp.ne.s32.totalorder %s79_s15, %s5686_s2  ;;  %p5692_p11 = scmp.lt.s32.totalorder %s5686_s2, %s5686_s2 }
  0x72   :  { %p5693_p12 = por %p5692_p11, %p5691_p10 }
  0x74   :  { %p5694_p13 = pnand %p5693_p12, %p5687_p9 }
  0x76   :  { %5697 = shalt.err (!%p5694_p13)
}
  0x77   :  { %84 = dma.hbm_to_vmem [thread:$0]  %s6628_s4, 1024, %s79_s15, [#allocation9], %s5802_s20, %s5802_s20, %s5803_s21  }
  0x78   :  { %s5698_s27 = scalar_lea.hbm %s6630_s6, 256 }
  0x79   :  { %p5699_p0 = scmp.ne.s32.totalorder %s6630_s6, %s5698_s27  ;;  %p5702_p1 = scmp.lt.u32.totalorder %s5698_s27, %s6630_s6 }
  0x7b   :  { %p5704_p2 = pnand %p5702_p1, %p5699_p0 }
  0x7d   :  { %5707 = shalt.err (!%p5704_p2)
}
  0x7e   :  { %s5708_s28 = scalar_lea.vmem %s6001_s1, 256  ;;  %p5713_p4 = scmp.lt.s32.totalorder %s6001_s1, %s6001_s1 }
  0x7f   :  { %p5709_p3 = scmp.ne.s32.totalorder %s6001_s1, %s5708_s28  ;;  %p5714_p5 = scmp.lt.s32.totalorder %s5708_s28, %s5708_s28 }
  0x81   :  { %p5715_p6 = por %p5714_p5, %p5713_p4 }
  0x83   :  { %p5716_p7 = pnand %p5715_p6, %p5709_p3 }
  0x85   :  { %5719 = shalt.err (!%p5716_p7)
}
  0x86   :  { %108 = dma.hbm_to_vmem [thread:$0]  %s6630_s6, 256, %s6001_s1, [#allocation12], %s5802_s20, %s5802_s20, %s5803_s21  }
  0x87   :  { %s5810_s16 = smov [#allocation16]   ;;  %s5811_s17 = smov [#allocation17]  }
  0x88   :  { %s130_s26 = sshll.u32 %s5810_s16, 4  ;;  %s142_s7 = sshll.u32 %s5811_s17, 4  ;;  %s131_s26 = int_to_ptr.vmem [resolvable:$true] %s130_s26  ;;  %s6038_s7 = int_to_ptr.vmem [resolvable:$true] %s142_s7 }
  0x89   :  { %s5720_s23 = scalar_lea.hbm %s6634_s10, 256 }
  0x8a   :  { %p5721_p8 = scmp.ne.s32.totalorder %s6634_s10, %s5720_s23  ;;  %p5724_p9 = scmp.lt.u32.totalorder %s5720_s23, %s6634_s10 }
  0x8c   :  { %p5726_p10 = pnand %p5724_p9, %p5721_p8 }
  0x8e   :  { %5729 = shalt.err (!%p5726_p10)
}
  0x8f   :  { %s5730_s6 = scalar_lea.vmem %s131_s26, 256  ;;  %p5735_p12 = scmp.lt.s32.totalorder %s131_s26, %s131_s26 }
  0x90   :  { %p5731_p11 = scmp.ne.s32.totalorder %s131_s26, %s5730_s6  ;;  %p5736_p13 = scmp.lt.s32.totalorder %s5730_s6, %s5730_s6 }
  0x92   :  { %p5737_p0 = por %p5736_p13, %p5735_p12 }
  0x94   :  { %p5738_p1 = pnand %p5737_p0, %p5731_p11 }
  0x96   :  { %5741 = shalt.err (!%p5738_p1)
}
  0x97   :  { %136 = dma.hbm_to_vmem [thread:$0]  %s6634_s10, 256, %s131_s26, [#allocation15], %s5802_s20, %s5802_s20, %s5803_s21  }
  0x98   :  { %s5742_s30 = scalar_lea.hbm %s6635_s11, 512 }
  0x99   :  { %p5743_p2 = scmp.ne.s32.totalorder %s6635_s11, %s5742_s30  ;;  %p5746_p3 = scmp.lt.u32.totalorder %s5742_s30, %s6635_s11 }
  0x9b   :  { %p5748_p4 = pnand %p5746_p3, %p5743_p2 }
  0x9d   :  { %5751 = shalt.err (!%p5748_p4)
}
  0x9e   :  { %s5752_s4 = scalar_lea.vmem %s6038_s7, 512  ;;  %p5757_p6 = scmp.lt.s32.totalorder %s6038_s7, %s6038_s7 }
  0x9f   :  { %p5753_p5 = scmp.ne.s32.totalorder %s6038_s7, %s5752_s4  ;;  %p5758_p7 = scmp.lt.s32.totalorder %s5752_s4, %s5752_s4 }
  0xa1   :  { %p5759_p8 = por %p5758_p7, %p5757_p6 }
  0xa3   :  { %p5760_p9 = pnand %p5759_p8, %p5753_p5 }
  0xa5   :  { %5763 = shalt.err (!%p5760_p9)
}
  0xa6   :  { %148 = dma.hbm_to_vmem [thread:$0]  %s6635_s11, 512, %s6038_s7, [#allocation18], %s5802_s20, %s5802_s20, %s5803_s21  }
  0xa7   :  { %5786 = dma.done.wait [#allocation3], 256  }
  0xa8   :  { %5787 = vsyncadd [#allocation3], 4294967040 }
  0xa9   :  { %5788 = dma.done.wait [#allocation6], 1024  }
  0xaa   :  { %5789 = vsyncadd [#allocation6], 4294966272 }
  0xab   :  { %5790 = dma.done.wait [#allocation9], 2048  }
  0xac   :  { %5791 = vsyncadd [#allocation9], 4294965248 }
  0xad   :  { %5792 = dma.done.wait [#allocation12], 1280  }
  0xae   :  { %5793 = vsyncadd [#allocation12], 4294966016 }
  0xaf   :  { %5794 = dma.done.wait [#allocation15], 1280  }
  0xb0   :  { %5795 = vsyncadd [#allocation15], 4294966016 }
  0xb1   :  { %5796 = dma.done.wait [#allocation18], 512  }
  0xb2   :  { %5797 = vsyncadd [#allocation18], 4294966784  ;;  %v202_v0 = vld [vmem:[#allocation8] sm:$0xff]  ;;  %v203_v1 = vld [vmem:[#allocation8 + $0x8] sm:$0xff]  ;;  %vm206_vm0 = vcmask 261120   ;;  %vm447_vm1 = vcmask 64512  }
  0xb3   :  { %v288_v2 = vld [vmem:[#allocation10] sm:$0xff]  ;;  %v5248_v3 = vpack.c.bf16 %v203_v1, %v202_v0  ;;  %v289_v4 = vld [vmem:[#allocation10 + $0x8] sm:$0xff]  ;;  %v204_v5 = vld [vmem:[#allocation8 + $0x10] sm:$0xff]  ;;  %vm632_vm4 = vcmask 130048   ;;  %s5812_s11 = smov 120   ;;  %s5813_s16 = smov 112  }
  0xb4   :  { %v205_v6 = vld [vmem:[#allocation8 + $0x18] sm:$0xff]  ;;  %v5256_v7 = vpack.c.bf16 %v289_v4, %v288_v2  ;;  %v290_v9 = vld [vmem:[#allocation10 + $0x10] sm:$0xff]  ;;  %v194_v13 = vld [vmem:[#allocation5] sm:$0xff]  ;;  %s5814_s26 = smov 104   ;;  %s5815_s17 = smov 16   ;;  %vm5817_vm6 = vmmov 0  }
  0xb5   :  { %v5252_v8 = vpack.c.bf16 %v205_v6, %v204_v5  ;;  %v291_v10 = vld [vmem:[#allocation10 + $0x18] sm:$0xff]  ;;  %v192_v11 = vld [vmem:[#allocation2] sm:$0xff]  ;;  %5249 = vmatprep.subr.bf16.mxu0 %v5248_v3  ;;  %v198_v14 = vld [vmem:[#allocation7] sm:$0xff]  ;;  %s5818_s7 = smov 24   ;;  %vm1651_vm7 = vcmask 195584   ;;  %s5819_s3 = smov [#allocation19]  }
  0xb6   :  { %v5260_v12 = vpack.c.bf16 %v291_v10, %v290_v9  ;;  %v193_v15 = vld [vmem:[#allocation2 + $0x8] sm:$0xff]  ;;  %5257 = vmatprep.subr.bf16.mxu1 %v5256_v7  ;;  %5251 = vmatpush3.bf16.msra.mxu0 %v5248_v3  ;;  %v196_v16 = vmul.f32 %v194_v13, %v192_v11  ;;  %v195_v17 = vld [vmem:[#allocation5 + $0x8] sm:$0xff]  ;;  %v6075_v22 = vld [vmem:[#allocation13] sm:$0xff]  ;;  %s4605_s0 = sshll.u32 %s5819_s3, 4  ;;  %s4606_s0 = int_to_ptr.vmem [resolvable:$true] %s4605_s0 }
  0xb7   :  { %v199_v18 = vld [vmem:[#allocation7 + $0x8] sm:$0xff]  ;;  %5259 = vmatpush3.bf16.msra.mxu1 %v5256_v7  ;;  %5253 = vmatprep.subr.bf16.mxu0 %v5252_v8  ;;  %v197_v19 = vmul.f32 %v195_v17, %v193_v15  ;;  %vm6099_vm2 = vmpackc.low %vm447_vm1, %vm447_vm1  ;;  %v367_v34 = vld [vmem:[#allocation11] sm:$0xff]  ;;  %p5769_p11 = scmp.lt.s32.totalorder %s4606_s0, %s4606_s0 }
  0xb8   :  { %5261 = vmatprep.subr.bf16.mxu1 %v5260_v12  ;;  %v200_v20 = vadd.f32 %v198_v14, %v196_v16  ;;  %v368_v35 = vld [vmem:[#allocation11 + $0x8] sm:$0xff]  ;;  %v369_v36 = vld [vmem:[#allocation11 + $0x10] sm:$0xff]  ;;  %v370_v38 = vld [vmem:[#allocation11 + $0x18] sm:$0xff] }
  0xb9   :  { %v201_v21 = vadd.f32 %v199_v18, %v197_v19  ;;  %v5264_v37 = vpack.c.bf16 %v368_v35, %v367_v34  ;;  %v5268_v40 = vpack.c.bf16 %v370_v38, %v369_v36  ;;  %v6117_v44 = vld [vmem:[#allocation16] sm:$0xff]  ;;  %v6121_v48 = vld [vmem:[#allocation16 + $0x8] sm:$0xff] }
  0xba   :  { %5255 = vmatpush3.bf16.msra.mxu0 %v5252_v8  ;;  %4925 = vmatprep.mubr.msk.f32.mxu0 %vm206_vm0, %v200_v20  ;;  %vm183_vm3 = vcmp.ne.f32.partialorder %v6117_v44, 0.0  ;;  %vm184_vm5 = vcmp.ne.f32.partialorder %v6121_v48, 0.0 }
  0xbb   :  { %5263 = vmatpush3.bf16.msra.mxu1 %v5260_v12  ;;  %4936 = vmatprep.mubr.msk.f32.mxu1 %vm206_vm0, %v200_v20 }
  0xbc   :  { %4950 = vmatprep.subr.mxu1 %v6075_v22  ;;  %5265 = vmatprep.subr.bf16.mxu0 %v5264_v37 }
  0xbd   :  { %4926 = vmatmul.mubr.msk.f32.vlgmr.msra.gmra.mrb[0].mxu0 %vm206_vm0, %v201_v21 }
  0xbe   :  { %4937 = vmatmul.mubr.msk.f32.vlgmr.msra.gmra.mrb[0].mxu1 %vm206_vm0, %v201_v21  ;;  %4947 = vmatprep.mubr.msk.f32.mxu0 %vm206_vm0, %v200_v20 }
  0xbf   :  { %4951 = vmatpush3.msra.mxu1 %v6075_v22  ;;  %5267 = vmatpush3.bf16.msra.mxu0 %v5264_v37 }
  0xc0   :  { %5269 = vmatprep.subr.bf16.mxu0 %v5268_v40 }
  0xc3   :  { %5271 = vmatpush3.bf16.msra.mxu0 %v5268_v40 }
  0xc6   :  { %4948 = vmatmul.mubr.msk.f32.vlgmr.msra.gmra.mrb[2].mxu0 %vm206_vm0, %v201_v21 }
 0x190   :  { %v6084_v23 = vpop.f32.mrb[0].mxu0 }
 0x191   :  { %v4938_v24 = vpop.f32.mrb[0].mxu1  ;;  %v6086_v25 = vpop.f32.mrb[1].mxu0  ;;  %v6110_v33 = vmul.f32 0.4204482, %v6084_v23 }
 0x192   :  { %v542_v26 = vmul.f32 0.4204482, %v4938_v24  ;;  %v358_v27 = vpop.f32.mrb[1].mxu1  ;;  %4952 = vmatprep.mubr.msk.f32.mxu1 %vm447_vm1, %v6086_v25  ;;  %v6091_v28 = vmul.f32 0.4204482, %v6086_v25 }
 0x193   :  { %v541_v29 = vmul.f32 0.4204482, %v358_v27  ;;  %4953 = vmatmul.mubr.msk.f32.vlgmr.msra.gmra.mrb[2].mxu1 %vm447_vm1, %v6084_v23 }
 0x194   :  { %4959 = vmatprep.mubr.msk.f32.mxu1 %vm447_vm1, %v6091_v28 }
 0x195   :  { %v5272_v31 = vpack.c.bf16 %v542_v26, %v541_v29  ;;  %v6103_v32 = vpack.i.bf16 %v542_v26, %v541_v29 }
 0x197   :  { %5274 = vmatprep.subr.msk.bf16.mxu1 %vm6099_vm2, %v5272_v31 }
 0x198   :  { %5277 = vmatpush3.bf16.xpose.msk.msra.mxu1 %vm6099_vm2, %v5272_v31 }
 0x199   :  { %v4949_v2 = vpop.f32.mrb[2].mxu0 }
 0x19a   :  { %v437_v3 = vpop.f32.mrb[3].mxu0 }
 0x19b   :  { %v5278_v4 = vpack.c.bf16 %v4949_v2, %v437_v3  ;;  %v6139_v5 = vpack.i.bf16 %v4949_v2, %v437_v3 }
 0x19d   :  { %5279 = vmatprep.subr.bf16.mxu0 %v5278_v4 }
 0x19e   :  { %5281 = vmatpush3.bf16.msra.mxu0 %v5278_v4 }
 0x19f   :  { %4960 = vmatmul.mubr.msk.f32.vlgmr.msra.gmra.mrb[4].mxu1 %vm447_vm1, %v6110_v33  ;;  %4969 = vmatprep.subr.mxu0 %v6075_v22 }
 0x266   :  { %v4954_v39 = vpop.f32.mrb[2].mxu1 }
 0x267   :  { %v520_v41 = vpop.f32.mrb[3].mxu1 }
 0x268   :  { %531 = vrot.lane.b32.xlu0 %v520_v41, %s5803_s21 }
 0x26c   :  { %533 = vrot.lane.b32.xlu0 %v4954_v39, %s5803_s21 }
 0x272   :  { %v4961_v42 = vpop.f32.mrb[4].mxu1 }
 0x273   :  { %v621_v43 = vpop.f32.mrb[5].mxu1 }
 0x2da   :  { %v532_v45 = vpop.permute.xlu0 %531 }
 0x2db   :  { %v537_v46 = vsel %vm447_vm1, %v520_v41, %v532_v45 }
 0x2dc   :  { %v622_v47 = vadd.f32 %v621_v43, %v537_v46 }
 0x2de   :  { %v534_v49 = vpop.permute.xlu0 %533  ;;  %v630_v50 = vsel %vm183_vm3, -1e+09, %v622_v47 }
 0x2df   :  { %v538_v51 = vsel %vm447_vm1, %v4954_v39, %v534_v49  ;;  %v633_v52 = vsel %vm632_vm4, %v630_v50, -inf }
 0x2e0   :  { %v627_v53 = vadd.f32 %v4961_v42, %v538_v51  ;;  %634 = vmax.xlane.f32.xlu1 %v633_v52 }
 0x2e2   :  { %v631_v54 = vsel %vm184_vm5, -1e+09, %v627_v53 }
 0x2e3   :  { %v636_v55 = vsel %vm632_vm4, %v631_v54, -inf }
 0x2e4   :  { %637 = vmax.xlane.f32.xlu1 %v636_v55 }
 0x36d   :  { %v635_v56 = vpop.xlane.xlu1 %634 }
 0x36e   :  { %v639_v57 = vsub.f32 %v630_v50, %v635_v56 }
 0x370   :  { %v641_v58 = vmul.f32 1.442695, %v639_v57 }
 0x371   :  { %v638_v59 = vpop.xlane.xlu1 %637 }
 0x372   :  { %5480 = vpow2.f32 %v641_v58  ;;  %v640_v60 = vsub.f32 %v631_v54, %v638_v59 }
 0x374   :  { %v643_v61 = vmul.f32 1.442695, %v640_v60 }
 0x376   :  { %5482 = vpow2.f32 %v643_v61 }
 0x37c   :  { %v5481_v62 = vpop.eup %5480 }
 0x37d   :  { %v645_v63 = vsel %vm632_vm4, %v5481_v62, 0.0 }
 0x37e   :  { %646 = vadd.xlane.f32.xlu0 %v645_v63 }
 0x380   :  { %v5483_v0 = vpop.eup %5482 }
 0x381   :  { %v648_v1 = vsel %vm632_vm4, %v5483_v0, 0.0 }
 0x382   :  { %649 = vadd.xlane.f32.xlu1 %v648_v1 }
 0x393   :  { %736 = vrot.lane.b32.xlu1 %v6086_v25, %s5812_s11 }
 0x394   :  { %831 = vrot.lane.b32.xlu0 %v6110_v33, %s5812_s11 }
 0x397   :  { %738 = vrot.lane.b32.xlu1 %v6084_v23, %s5812_s11 }
 0x39b   :  { %5421 = vrot.lane.b32.xlu1 %v6103_v32, %s5812_s11 }
 0x39f   :  { %829 = vrot.lane.b32.xlu1 %v6091_v28, %s5812_s11 }
 0x40b   :  { %v647_v6 = vpop.xlane.xlu0 %646 }
 0x40c   :  { %5484 = vrcp.f32 %v647_v6 }
 0x40f   :  { %v650_v7 = vpop.xlane.xlu1 %649  ;;  %v832_v19 = vpop.permute.xlu0 %831 }
 0x410   :  { %5486 = vrcp.f32 %v650_v7 }
 0x413   :  { %v737_v8 = vpop.permute.xlu1 %736 }
 0x416   :  { %v5485_v9 = vpop.eup %5484 }
 0x417   :  { %v739_v10 = vpop.permute.xlu1 %738  ;;  %v653_v11 = vmul.f32 %v5485_v9, %v5481_v62 }
 0x419   :  { %4966 = vmatprep.mubr.msk.f32.mxu0 %vm632_vm4, %v653_v11 }
 0x41a   :  { %v5487_v12 = vpop.eup %5486 }
 0x41b   :  { %v5422_v13 = vpop.permute.xlu1 %5421  ;;  %v654_v14 = vmul.f32 %v5487_v12, %v5483_v0 }
 0x41c   :  { %v5424_v15 = vunpack.i.h.bf16 %v5422_v13  ;;  %v5423_v16 = vunpack.i.l.bf16 %v5422_v13 }
 0x41d   :  { %4967 = vmatmul.mubr.msk.f32.vlgmr.msra.gmra.mrb[4].mxu0 %vm632_vm4, %v654_v14 }
 0x41e   :  { %v5282_v17 = vpack.c.bf16 %v5424_v15, %v5423_v16  ;;  %4970 = vmatpush3.msra.mxu0 %v6075_v22  ;;  %4971 = vmatprep.mubr.msk.f32.mxu0 %vm447_vm1, %v737_v8 }
 0x41f   :  { %v830_v18 = vpop.permute.xlu1 %829 }
 0x420   :  { %5284 = vmatprep.subr.msk.bf16.mxu1 %vm6099_vm2, %v5282_v17  ;;  %4978 = vmatprep.mubr.msk.f32.mxu1 %vm447_vm1, %v830_v18 }
 0x421   :  { %4972 = vmatmul.mubr.msk.f32.vlgmr.msra.gmra.mrb[6].mxu0 %vm447_vm1, %v739_v10  ;;  %5287 = vmatpush3.bf16.xpose.msk.msra.mxu1 %vm6099_vm2, %v5282_v17 }
 0x428   :  { %4979 = vmatmul.mubr.msk.f32.vlgmr.msra.gmra.mrb[6].mxu1 %vm447_vm1, %v832_v19 }
 0x4f0   :  { %v6157_v20 = vpop.f32.mrb[4].mxu0 }
 0x4f1   :  { %v6159_v21 = vpop.f32.mrb[5].mxu0 }
 0x4f4   :  { %v4973_v24 = vpop.f32.mrb[6].mxu0 }
 0x4f5   :  { %v810_v26 = vpop.f32.mrb[7].mxu0 }
 0x4f6   :  { %821 = vrot.lane.b32.xlu1 %v810_v26, %s5803_s21 }
 0x4fa   :  { %823 = vrot.lane.b32.xlu1 %v4973_v24, %s5803_s21 }
 0x4fb   :  { %v4980_v27 = vpop.f32.mrb[6].mxu1 }
 0x4fc   :  { %v911_v29 = vpop.f32.mrb[7].mxu1 }
 0x568   :  { %v822_v31 = vpop.permute.xlu1 %821 }
 0x569   :  { %v827_v34 = vsel %vm447_vm1, %v810_v26, %v822_v31 }
 0x56a   :  { %v912_v35 = vadd.f32 %v911_v29, %v827_v34 }
 0x56c   :  { %v824_v36 = vpop.permute.xlu1 %823  ;;  %v920_v37 = vsel %vm183_vm3, -1e+09, %v912_v35 }
 0x56d   :  { %v828_v38 = vsel %vm447_vm1, %v4973_v24, %v824_v36  ;;  %v922_v39 = vsel %vm632_vm4, %v920_v37, -inf }
 0x56e   :  { %v917_v40 = vadd.f32 %v4980_v27, %v828_v38  ;;  %923 = vmax.xlane.f32.xlu1 %v922_v39 }
 0x570   :  { %v921_v41 = vsel %vm184_vm5, -1e+09, %v917_v40 }
 0x571   :  { %v925_v42 = vsel %vm632_vm4, %v921_v41, -inf }
 0x572   :  { %926 = vmax.xlane.f32.xlu0 %v925_v42 }
 0x57f   :  { %1033 = vrot.lane.b32.xlu1 %v6086_v25, %s5813_s16 }
 0x588   :  { %5426 = vrot.lane.b32.xlu0 %v6139_v5, %s5812_s11 }
 0x58c   :  { %5431 = vrot.lane.b32.xlu0 %v6103_v32, %s5813_s16 }
 0x590   :  { %1128 = vrot.lane.b32.xlu0 %v6110_v33, %s5813_s16 }
 0x5fb   :  { %v924_v43 = vpop.xlane.xlu1 %923 }
 0x5fc   :  { %v928_v45 = vsub.f32 %v920_v37, %v924_v43 }
 0x5fe   :  { %v930_v49 = vmul.f32 1.442695, %v928_v45 }
 0x5ff   :  { %v927_v46 = vpop.xlane.xlu0 %926  ;;  %v1034_v63 = vpop.permute.xlu1 %1033 }
 0x600   :  { %v929_v47 = vsub.f32 %v921_v41, %v927_v46 }
 0x602   :  { %v932_v50 = vmul.f32 1.442695, %v929_v47 }
 0x603   :  { %v5427_v51 = vpop.permute.xlu0 %5426 }
 0x604   :  { %5488 = vpow2.f32 %v932_v50  ;;  %v5429_v52 = vunpack.i.h.bf16 %v5427_v51  ;;  %v5428_v53 = vunpack.i.l.bf16 %v5427_v51 }
 0x605   :  { %5490 = vpow2.f32 %v930_v49 }
 0x606   :  { %v5288_v54 = vpack.c.bf16 %v5429_v52, %v5428_v53 }
 0x607   :  { %v5432_v55 = vpop.permute.xlu0 %5431 }
 0x608   :  { %v5434_v56 = vunpack.i.h.bf16 %v5432_v55  ;;  %v5433_v57 = vunpack.i.l.bf16 %v5432_v55  ;;  %5289 = vmatprep.subr.bf16.mxu0 %v5288_v54 }
 0x609   :  { %5291 = vmatpush3.bf16.msra.mxu0 %v5288_v54 }
 0x60a   :  { %v5292_v58 = vpack.c.bf16 %v5434_v56, %v5433_v57  ;;  %4988 = vmatprep.subr.mxu0 %v6075_v22 }
 0x60b   :  { %v1129_v4 = vpop.permute.xlu0 %1128 }
 0x60c   :  { %5294 = vmatprep.subr.msk.bf16.mxu1 %vm6099_vm2, %v5292_v58 }
 0x60d   :  { %5297 = vmatpush3.bf16.xpose.msk.msra.mxu1 %vm6099_vm2, %v5292_v58 }
 0x60e   :  { %v5489_v59 = vpop.eup %5488 }
 0x60f   :  { %v937_v60 = vsel %vm632_vm4, %v5489_v59, 0.0  ;;  %v5491_v61 = vpop.eup %5490 }
 0x610   :  { %938 = vadd.xlane.f32.xlu1 %v937_v60  ;;  %v934_v62 = vsel %vm632_vm4, %v5491_v61, 0.0 }
 0x614   :  { %935 = vadd.xlane.f32.xlu1 %v934_v62 }
 0x625   :  { %1035 = vrot.lane.b32.xlu1 %v6084_v23, %s5813_s16 }
 0x629   :  { %1126 = vrot.lane.b32.xlu1 %v6091_v28, %s5813_s16 }
 0x69d   :  { %v939_v0 = vpop.xlane.xlu1 %938 }
 0x69e   :  { %5492 = vrcp.f32 %v939_v0 }
 0x6a1   :  { %v936_v1 = vpop.xlane.xlu1 %935 }
 0x6a2   :  { %5494 = vrcp.f32 %v936_v1 }
 0x6a5   :  { %v1036_v2 = vpop.permute.xlu1 %1035 }
 0x6a8   :  { %v5493_v6 = vpop.eup %5492 }
 0x6a9   :  { %v1127_v3 = vpop.permute.xlu1 %1126  ;;  %v943_v9 = vmul.f32 %v5493_v6, %v5489_v59 }
 0x6aa   :  { %4997 = vmatprep.mubr.msk.f32.mxu1 %vm447_vm1, %v1127_v3 }
 0x6ab   :  { %4998 = vmatmul.mubr.msk.f32.vlgmr.msra.gmra.mrb[8].mxu1 %vm447_vm1, %v1129_v4 }
 0x6ac   :  { %v5495_v7 = vpop.eup %5494 }
 0x6ad   :  { %v942_v8 = vmul.f32 %v5495_v7, %v5491_v61 }
 0x6af   :  { %4985 = vmatprep.mubr.msk.f32.mxu0 %vm632_vm4, %v942_v8 }
 0x6b0   :  { %4986 = vmatmul.mubr.msk.f32.vlgmr.msra.gmra.mrb[8].mxu0 %vm632_vm4, %v943_v9 }
 0x6b1   :  { %4989 = vmatpush3.msra.mxu0 %v6075_v22  ;;  %4990 = vmatprep.mubr.msk.f32.mxu0 %vm447_vm1, %v1034_v63 }
 0x6b4   :  { %4991 = vmatmul.mubr.msk.f32.vlgmr.msra.gmra.mrb[10].mxu0 %vm447_vm1, %v1036_v2 }
 0x77e   :  { %v4999_v10 = vpop.f32.mrb[8].mxu1 }
 0x77f   :  { %v1208_v11 = vpop.f32.mrb[9].mxu1 }
 0x783   :  { %v6197_v12 = vpop.f32.mrb[8].mxu0 }
 0x784   :  { %v6199_v13 = vpop.f32.mrb[9].mxu0 }
 0x787   :  { %v4992_v14 = vpop.f32.mrb[10].mxu0 }
 0x788   :  { %1120 = vrot.lane.b32.xlu0 %v4992_v14, %s5803_s21  ;;  %v1107_v15 = vpop.f32.mrb[11].mxu0 }
 0x789   :  { %1118 = vrot.lane.b32.xlu1 %v1107_v15, %s5803_s21 }
 0x7fa   :  { %v1121_v16 = vpop.permute.xlu0 %1120 }
 0x7fb   :  { %v1125_v17 = vsel %vm447_vm1, %v4992_v14, %v1121_v16  ;;  %v1119_v18 = vpop.permute.xlu1 %1118 }
 0x7fc   :  { %v1214_v19 = vadd.f32 %v4999_v10, %v1125_v17  ;;  %v1124_v24 = vsel %vm447_vm1, %v1107_v15, %v1119_v18 }
 0x7fd   :  { %v1209_v26 = vadd.f32 %v1208_v11, %v1124_v24 }
 0x7fe   :  { %v1218_v27 = vsel %vm184_vm5, -1e+09, %v1214_v19 }
 0x7ff   :  { %v1222_v29 = vsel %vm632_vm4, %v1218_v27, -inf  ;;  %v1217_v31 = vsel %vm183_vm3, -1e+09, %v1209_v26 }
 0x800   :  { %1223 = vmax.xlane.f32.xlu0 %v1222_v29  ;;  %v1219_v34 = vsel %vm632_vm4, %v1217_v31, -inf }
 0x801   :  { %1220 = vmax.xlane.f32.xlu1 %v1219_v34 }
 0x88d   :  { %v1224_v35 = vpop.xlane.xlu0 %1223 }
 0x88e   :  { %v1226_v36 = vsub.f32 %v1218_v27, %v1224_v35  ;;  %v1221_v37 = vpop.xlane.xlu1 %1220 }
 0x88f   :  { %v1225_v38 = vsub.f32 %v1217_v31, %v1221_v37 }
 0x890   :  { %v1229_v39 = vmul.f32 1.442695, %v1226_v36 }
 0x891   :  { %v1227_v40 = vmul.f32 1.442695, %v1225_v38 }
 0x892   :  { %5496 = vpow2.f32 %v1229_v39 }
 0x893   :  { %5498 = vpow2.f32 %v1227_v40 }
 0x89c   :  { %v5497_v41 = vpop.eup %5496 }
 0x89d   :  { %v5499_v42 = vpop.eup %5498  ;;  %v1234_v43 = vsel %vm632_vm4, %v5497_v41, 0.0 }
 0x89e   :  { %1235 = vadd.xlane.f32.xlu1 %v1234_v43  ;;  %v1231_v45 = vsel %vm632_vm4, %v5499_v42, 0.0 }
 0x89f   :  { %1232 = vadd.xlane.f32.xlu0 %v1231_v45 }
 0x8af   :  { %1328 = vrot.lane.b32.xlu1 %v6086_v25, %s5814_s26 }
 0x8b3   :  { %1330 = vrot.lane.b32.xlu1 %v6084_v23, %s5814_s26 }
 0x8b5   :  { %5436 = vrot.lane.b32.xlu0 %v6139_v5, %s5813_s16 }
 0x8b7   :  { %1421 = vrot.lane.b32.xlu1 %v6091_v28, %s5814_s26 }
 0x8b9   :  { %5441 = vrot.lane.b32.xlu0 %v6103_v32, %s5814_s26 }
 0x8bd   :  { %1423 = vrot.lane.b32.xlu0 %v6110_v33, %s5814_s26 }
 0x92b   :  { %v1236_v46 = vpop.xlane.xlu1 %1235 }
 0x92c   :  { %5500 = vrcp.f32 %v1236_v46  ;;  %v1233_v47 = vpop.xlane.xlu0 %1232 }
 0x92d   :  { %5502 = vrcp.f32 %v1233_v47 }
 0x92f   :  { %v1329_v25 = vpop.permute.xlu1 %1328 }
 0x930   :  { %v5437_v49 = vpop.permute.xlu0 %5436 }
 0x931   :  { %v5439_v50 = vunpack.i.h.bf16 %v5437_v49  ;;  %v5438_v23 = vunpack.i.l.bf16 %v5437_v49 }
 0x933   :  { %v5298_v51 = vpack.c.bf16 %v5439_v50, %v5438_v23  ;;  %v1331_v52 = vpop.permute.xlu1 %1330  ;;  %v6279_v23 = vld [vmem:[%s6633_s9] sm:$0xff] }
 0x934   :  { %v5442_v53 = vpop.permute.xlu0 %5441 }
 0x935   :  { %v5444_v54 = vunpack.i.h.bf16 %v5442_v53  ;;  %v5443_v55 = vunpack.i.l.bf16 %v5442_v53  ;;  %5299 = vmatprep.subr.bf16.mxu0 %v5298_v51 }
 0x936   :  { %v5501_v28 = vpop.eup %5500  ;;  %5301 = vmatpush3.bf16.msra.mxu0 %v5298_v51  ;;  %v6284_v51 = vld [vmem:[%s6633_s9 + $0x8] sm:$0xff] }
 0x937   :  { %v5503_v32 = vpop.eup %5502  ;;  %v5302_v56 = vpack.c.bf16 %v5444_v54, %v5443_v55  ;;  %v1422_v57 = vpop.permute.xlu1 %1421  ;;  %5007 = vmatprep.subr.mxu0 %v6075_v22  ;;  %v1240_v58 = vmul.f32 %v5501_v28, %v5497_v41  ;;  %v6300_v54 = vld [vmem:[%s6633_s9 + $0x10] sm:$0xff] }
 0x938   :  { %5016 = vmatprep.mubr.msk.f32.mxu1 %vm447_vm1, %v1422_v57  ;;  %v1239_v33 = vmul.f32 %v5503_v32, %v5499_v42  ;;  %v1424_v59 = vpop.permute.xlu0 %1423  ;;  %v2262_v32 = vld [vmem:[#allocation14] sm:$0xff] }
 0x939   :  { %5304 = vmatprep.subr.msk.bf16.mxu1 %vm6099_vm2, %v5302_v56 }
 0x93a   :  { %5004 = vmatprep.mubr.msk.f32.mxu0 %vm632_vm4, %v1239_v33  ;;  %5307 = vmatpush3.bf16.xpose.msk.msra.mxu1 %vm6099_vm2, %v5302_v56  ;;  %v2263_v56 = vld [vmem:[#allocation14 + $0x8] sm:$0xff]  ;;  %v2264_v33 = vld [vmem:[#allocation14 + $0x10] sm:$0xff] }
 0x93b   :  { %5005 = vmatmul.mubr.msk.f32.vlgmr.msra.gmra.mrb[12].mxu0 %vm632_vm4, %v1240_v58  ;;  %v5312_v57 = vpack.c.bf16 %v2263_v56, %v2262_v32  ;;  %v2265_v58 = vld [vmem:[#allocation14 + $0x18] sm:$0xff] }
 0x93c   :  { %5008 = vmatpush3.msra.mxu0 %v6075_v22  ;;  %5009 = vmatprep.mubr.msk.f32.mxu0 %vm447_vm1, %v1329_v25 }
 0x93f   :  { %5010 = vmatmul.mubr.msk.f32.vlgmr.msra.gmra.mrb[14].mxu0 %vm447_vm1, %v1331_v52 }
 0x941   :  { %5017 = vmatmul.mubr.msk.f32.vlgmr.msra.gmra.mrb[10].mxu1 %vm447_vm1, %v1424_v59  ;;  %v5316_v59 = vpack.c.bf16 %v2265_v58, %v2264_v33  ;;  %v2361_v33 = vld [vmem:[#allocation7 + $0x18] sm:$0xff] }
 0xa0e   :  { %v6237_v60 = vpop.f32.mrb[12].mxu0 }
 0xa0f   :  { %v1319_v61 = vpop.f32.mrb[13].mxu0 }
 0xa12   :  { %v5011_v62 = vpop.f32.mrb[14].mxu0 }
 0xa13   :  { %1415 = vrot.lane.b32.xlu0 %v5011_v62, %s5803_s21  ;;  %v1402_v63 = vpop.f32.mrb[15].mxu0 }
 0xa14   :  { %1413 = vrot.lane.b32.xlu1 %v1402_v63, %s5803_s21  ;;  %v5018_v0 = vpop.f32.mrb[10].mxu1 }
 0xa15   :  { %v1503_v1 = vpop.f32.mrb[11].mxu1 }
 0xa85   :  { %v1416_v2 = vpop.permute.xlu0 %1415 }
 0xa86   :  { %v1420_v22 = vsel %vm447_vm1, %v5011_v62, %v1416_v2  ;;  %v1414_v3 = vpop.permute.xlu1 %1413 }
 0xa87   :  { %v1509_v4 = vadd.f32 %v5018_v0, %v1420_v22  ;;  %v1419_v6 = vsel %vm447_vm1, %v1402_v63, %v1414_v3 }
 0xa88   :  { %v1504_v7 = vadd.f32 %v1503_v1, %v1419_v6 }
 0xa89   :  { %v1513_v8 = vsel %vm184_vm5, -1e+09, %v1509_v4 }
 0xa8a   :  { %v1517_v9 = vsel %vm632_vm4, %v1513_v8, -inf  ;;  %v1512_v10 = vsel %vm183_vm3, -1e+09, %v1504_v7 }
 0xa8b   :  { %1518 = vmax.xlane.f32.xlu0 %v1517_v9  ;;  %v1514_v11 = vsel %vm632_vm4, %v1512_v10, -inf }
 0xa8c   :  { %1515 = vmax.xlane.f32.xlu1 %v1514_v11 }
 0xb18   :  { %v1519_v14 = vpop.xlane.xlu0 %1518 }
 0xb19   :  { %v1521_v15 = vsub.f32 %v1513_v8, %v1519_v14  ;;  %v1516_v16 = vpop.xlane.xlu1 %1515 }
 0xb1a   :  { %v1520_v17 = vsub.f32 %v1512_v10, %v1516_v16 }
 0xb1b   :  { %v1524_v18 = vmul.f32 1.442695, %v1521_v15 }
 0xb1c   :  { %v1522_v19 = vmul.f32 1.442695, %v1520_v17 }
 0xb1d   :  { %5504 = vpow2.f32 %v1524_v18 }
 0xb1e   :  { %5506 = vpow2.f32 %v1522_v19 }
 0xb27   :  { %v5505_v24 = vpop.eup %5504 }
 0xb28   :  { %v5507_v26 = vpop.eup %5506  ;;  %v1529_v27 = vsel %vm632_vm4, %v5505_v24, 0.0 }
 0xb29   :  { %1530 = vadd.xlane.f32.xlu1 %v1529_v27  ;;  %v1526_v29 = vsel %vm632_vm4, %v5507_v26, 0.0 }
 0xb2a   :  { %1527 = vadd.xlane.f32.xlu0 %v1526_v29 }
 0xb3a   :  { %1625 = vrot.lane.b32.xlu1 %v6199_v13, %s5803_s21 }
 0xb3e   :  { %1633 = vrot.lane.b32.xlu1 %v1319_v61, %s5815_s17 }
 0xb40   :  { %5446 = vrot.lane.b32.xlu0 %v6139_v5, %s5814_s26  ;;  %v5816_v5 = vmov 0.0  }
 0xb41   :  { %5031 = vmatprep.subr.mxu1 %v5816_v5  ;;  %5033 = vmatprep.mubr.msk.f32.mxu1 %vm5817_vm6, %v5816_v5 }
 0xb42   :  { %1627 = vrot.lane.b32.xlu1 %v6197_v12, %s5803_s21 }
 0xbb6   :  { %v1531_v31 = vpop.xlane.xlu1 %1530 }
 0xbb7   :  { %5508 = vrcp.f32 %v1531_v31  ;;  %v1528_v34 = vpop.xlane.xlu0 %1527 }
 0xbb8   :  { %5510 = vrcp.f32 %v1528_v34 }
 0xbba   :  { %v1626_v43 = vpop.permute.xlu1 %1625 }
 0xbbb   :  { %v5447_v35 = vpop.permute.xlu0 %5446  ;;  %v1647_v46 = vsel %vm447_vm1, %v6159_v21, %v1626_v43  ;;  %v2454_v43 = vld [vmem:[#allocation10 + $0x38] sm:$0xff] }
 0xbbc   :  { %v5449_v36 = vunpack.i.h.bf16 %v5447_v35  ;;  %v5448_v37 = vunpack.i.l.bf16 %v5447_v35  ;;  %v2365_v35 = vld [vmem:[#allocation8 + $0x20] sm:$0xff] }
 0xbbe   :  { %v5308_v38 = vpack.c.bf16 %v5449_v36, %v5448_v37  ;;  %v1634_v45 = vpop.permute.xlu1 %1633  ;;  %v2366_v36 = vld [vmem:[#allocation8 + $0x28] sm:$0xff] }
 0xbbf   :  { %v1649_v47 = vsel %vm632_vm4, %v1647_v46, %v1634_v45  ;;  %v5320_v37 = vpack.c.bf16 %v2366_v36, %v2365_v35  ;;  %v2531_v46 = vld [vmem:[#allocation11 + $0x20] sm:$0xff] }
 0xbc0   :  { %5309 = vmatprep.subr.bf16.mxu0 %v5308_v38 }
 0xbc1   :  { %v5509_v39 = vpop.eup %5508  ;;  %5311 = vmatpush3.bf16.msra.mxu0 %v5308_v38  ;;  %v2451_v38 = vld [vmem:[#allocation10 + $0x20] sm:$0xff] }
 0xbc2   :  { %v5511_v13 = vpop.eup %5510  ;;  %v1535_v41 = vmul.f32 %v5509_v39, %v5505_v24  ;;  %5026 = vmatprep.subr.mxu0 %v5816_v5  ;;  %v1628_v50 = vpop.permute.xlu1 %1627  ;;  %v2452_v39 = vld [vmem:[#allocation10 + $0x28] sm:$0xff] }
 0xbc3   :  { %v1534_v40 = vmul.f32 %v5511_v13, %v5507_v26  ;;  %v1648_v52 = vsel %vm447_vm1, %v6157_v20, %v1628_v50  ;;  %v6305_v20 = vld [vmem:[%s6633_s9 + $0x18] sm:$0xff]  ;;  %v5328_v13 = vpack.c.bf16 %v2452_v39, %v2451_v38  ;;  %v4679_v50 = vld [vmem:[%s6632_s8] ss:$0 sm:$0xff] }
 0xbc5   :  { %5023 = vmatprep.mubr.msk.f32.mxu0 %vm632_vm4, %v1534_v40  ;;  %v2367_v40 = vld [vmem:[#allocation8 + $0x30] sm:$0xff] }
 0xbc6   :  { %5024 = vmatmul.mubr.msk.f32.vlgmr.msra.gmra.mrb[16].mxu0 %vm632_vm4, %v1535_v41  ;;  %v2368_v41 = vld [vmem:[#allocation8 + $0x38] sm:$0xff] }
 0xbc7   :  { %5028 = vmatprep.mubr.msk.f32.mxu0 %vm5817_vm6, %v5816_v5 }
 0xc99   :  { %v5025_v12 = vpop.f32.mrb[16].mxu0 }
 0xc9a   :  { %1643 = vrot.lane.b32.xlu1 %v5025_v12, %s5818_s7  ;;  %v1614_v42 = vpop.f32.mrb[17].mxu0  ;;  %v5324_v12 = vpack.c.bf16 %v2368_v41, %v2367_v40 }
 0xc9b   :  { %1641 = vrot.lane.b32.xlu0 %v1614_v42, %s5818_s7  ;;  %v2453_v42 = vld [vmem:[#allocation10 + $0x30] sm:$0xff] }
 0xc9c   :  { %v5332_v45 = vpack.c.bf16 %v2454_v43, %v2453_v42 }
 0xc9f   :  { %1635 = vrot.lane.b32.xlu0 %v6237_v60, %s5815_s17 }
 0xd0c   :  { %v1644_v55 = vpop.permute.xlu1 %1643 }
 0xd0d   :  { %v1642_v25 = vpop.permute.xlu0 %1641 }
 0xd0e   :  { %v1652_v49 = vsel %vm1651_vm7, %v1649_v47, %v1642_v25  ;;  %v2532_v47 = vld [vmem:[#allocation11 + $0x28] sm:$0xff] }
 0xd0f   :  { %5027 = vmatpush3.xpose.msk.msra.mxu0 %vm206_vm0, %v1652_v49  ;;  %5032 = vmatpush3.xpose.msk.msra.mxu1 %vm206_vm0, %v1652_v49  ;;  %v5336_v25 = vpack.c.bf16 %v2532_v47, %v2531_v46 }
 0xd10   :  { %5036 = vmatprep.subr.mxu0 %v5816_v5  ;;  %5041 = vmatprep.subr.mxu1 %v5816_v5 }
 0xd11   :  { %v1636_v21 = vpop.permute.xlu0 %1635 }
 0xd12   :  { %5029 = vmatmul.mubr.msk.f32.vlgmr.msra.gmra.mrb[18].mxu0 %vm206_vm0, %v6279_v23  ;;  %5034 = vmatmul.mubr.msk.f32.vlgmr.msra.gmra.mrb[12].mxu1 %vm206_vm0, %v6284_v51  ;;  %v1650_v53 = vsel %vm632_vm4, %v1648_v52, %v1636_v21  ;;  %v2356_v52 = vld [vmem:[#allocation5 + $0x18] sm:$0xff] }
 0xd13   :  { %5037 = vmatpush3.xpose.msk.msra.mxu0 %vm206_vm0, %v1652_v49  ;;  %5042 = vmatpush3.xpose.msk.msra.mxu1 %vm206_vm0, %v1652_v49  ;;  %v1653_v28 = vsel %vm1651_vm7, %v1650_v53, %v1644_v55  ;;  %v6354_v49 = vld [vmem:[#allocation13 + $0x8] sm:$0xff] }
 0xd14   :  { %5038 = vmatprep.mubr.msk.f32.mxu0 %vm5817_vm6, %v5816_v5  ;;  %5043 = vmatprep.mubr.msk.f32.mxu1 %vm5817_vm6, %v5816_v5 }
 0xd15   :  { %5046 = vmatprep.subr.mxu0 %v5816_v5  ;;  %5051 = vmatprep.subr.mxu1 %v5816_v5 }
 0xd16   :  { %5039 = vmatmul.mubr.msk.f32.vlgmr.msra.gmra.mrb[20].mxu0 %vm206_vm0, %v6300_v54  ;;  %5044 = vmatmul.mubr.msk.f32.vlgmr.msra.gmra.mrb[14].mxu1 %vm206_vm0, %v6305_v20 }
 0xd17   :  { %5047 = vmatpush3.xpose.msk.msra.mxu0 %vm206_vm0, %v1653_v28  ;;  %5052 = vmatpush3.xpose.msk.msra.mxu1 %vm206_vm0, %v1653_v28 }
 0xd18   :  { %5048 = vmatprep.mubr.msk.f32.mxu0 %vm5817_vm6, %v5816_v5  ;;  %5053 = vmatprep.mubr.msk.f32.mxu1 %vm5817_vm6, %v5816_v5 }
 0xd19   :  { %5056 = vmatprep.subr.mxu0 %v5816_v5  ;;  %5061 = vmatprep.subr.mxu1 %v5816_v5 }
 0xd1a   :  { %5049 = vmatmul.mubr.msk.f32.vlgmr.msra.gmra.mrb[22].mxu0 %vm206_vm0, %v6279_v23  ;;  %5054 = vmatmul.mubr.msk.f32.vlgmr.msra.gmra.mrb[16].mxu1 %vm206_vm0, %v6284_v51 }
 0xd1b   :  { %5057 = vmatpush3.xpose.msk.msra.mxu0 %vm206_vm0, %v1653_v28  ;;  %5062 = vmatpush3.xpose.msk.msra.mxu1 %vm206_vm0, %v1653_v28  ;;  %v2355_v28 = vld [vmem:[#allocation5 + $0x10] sm:$0xff] }
 0xd1c   :  { %5058 = vmatprep.mubr.msk.f32.mxu0 %vm5817_vm6, %v5816_v5  ;;  %5063 = vmatprep.mubr.msk.f32.mxu1 %vm5817_vm6, %v5816_v5 }
 0xd1d   :  { %5313 = vmatprep.subr.bf16.mxu0 %v5312_v57  ;;  %5321 = vmatprep.subr.bf16.mxu1 %v5320_v37 }
 0xd1e   :  { %5059 = vmatmul.mubr.msk.f32.vlgmr.msra.gmra.mrb[24].mxu0 %vm206_vm0, %v6300_v54  ;;  %5064 = vmatmul.mubr.msk.f32.vlgmr.msra.gmra.mrb[18].mxu1 %vm206_vm0, %v6305_v20 }
 0xd1f   :  { %5315 = vmatpush3.bf16.msra.mxu0 %v5312_v57  ;;  %5323 = vmatpush3.bf16.msra.mxu1 %v5320_v37  ;;  %v2360_v57 = vld [vmem:[#allocation7 + $0x10] sm:$0xff] }
 0xd20   :  { %5317 = vmatprep.subr.bf16.mxu0 %v5316_v59  ;;  %5325 = vmatprep.subr.bf16.mxu1 %v5324_v12 }
 0xd23   :  { %5319 = vmatpush3.bf16.msra.mxu0 %v5316_v59  ;;  %5327 = vmatpush3.bf16.msra.mxu1 %v5324_v12  ;;  %v2533_v59 = vld [vmem:[#allocation11 + $0x30] sm:$0xff] }
 0xd24   :  { %5329 = vmatprep.subr.bf16.mxu0 %v5328_v13  ;;  %5337 = vmatprep.subr.bf16.mxu1 %v5336_v25 }
 0xde5   :  { %v1726_v60 = vpop.f32.mrb[18].mxu0  ;;  %v1799_v61 = vpop.f32.mrb[12].mxu1 }
 0xde6   :  { %1950 = vrot.lane.b32.xlu0 %v1799_v61, %s5803_s21  ;;  %v5030_v62 = vpop.f32.mrb[19].mxu0  ;;  %v5035_v63 = vpop.f32.mrb[13].mxu1 }
 0xde9   :  { %v1872_v0 = vpop.f32.mrb[20].mxu0  ;;  %v1945_v1 = vpop.f32.mrb[14].mxu1 }
 0xdea   :  { %v5045_v2 = vpop.f32.mrb[15].mxu1  ;;  %1954 = vrot.lane.b32.xlu1 %v1872_v0, %s5815_s17  ;;  %v5040_v22 = vpop.f32.mrb[21].mxu0 }
 0xded   :  { %v2033_v3 = vpop.f32.mrb[22].mxu0  ;;  %v2103_v4 = vpop.f32.mrb[16].mxu1 }
 0xdee   :  { %1958 = vrot.lane.b32.xlu1 %v1945_v1, %s5818_s7  ;;  %2248 = vrot.lane.b32.xlu0 %v2103_v4, %s5803_s21  ;;  %v5050_v6 = vpop.f32.mrb[23].mxu0  ;;  %v5055_v7 = vpop.f32.mrb[17].mxu1 }
 0xdf1   :  { %v2173_v8 = vpop.f32.mrb[24].mxu0  ;;  %v2243_v9 = vpop.f32.mrb[18].mxu1 }
 0xdf2   :  { %v5065_v10 = vpop.f32.mrb[19].mxu1  ;;  %2252 = vrot.lane.b32.xlu0 %v2173_v8, %s5815_s17  ;;  %v5060_v11 = vpop.f32.mrb[25].mxu0  ;;  %2256 = vrot.lane.b32.xlu1 %v2243_v9, %s5818_s7 }
 0xe58   :  { %v1951_v14 = vpop.permute.xlu0 %1950 }
 0xe59   :  { %v1961_v16 = vsel %vm447_vm1, %v1726_v60, %v1951_v14  ;;  %v2534_v60 = vld [vmem:[#allocation11 + $0x38] sm:$0xff] }
 0xe5a   :  { %v5340_v63 = vpack.c.bf16 %v2534_v60, %v2533_v59 }
 0xe5c   :  { %v1955_v15 = vpop.permute.xlu1 %1954 }
 0xe5d   :  { %v1962_v17 = vsel %vm632_vm4, %v1961_v16, %v1955_v15 }
 0xe60   :  { %v2249_v18 = vpop.permute.xlu0 %2248  ;;  %v1959_v19 = vpop.permute.xlu1 %1958 }
 0xe61   :  { %v1963_v24 = vsel %vm1651_vm7, %v1962_v17, %v1959_v19  ;;  %v2259_v26 = vsel %vm447_vm1, %v2033_v3, %v2249_v18 }
 0xe62   :  { %5074 = vmatprep.mubr.msk.f32.mxu0 %vm206_vm0, %v1963_v24 }
 0xe64   :  { %v2253_v27 = vpop.permute.xlu0 %2252  ;;  %v2257_v29 = vpop.permute.xlu1 %2256 }
 0xe65   :  { %v2260_v31 = vsel %vm632_vm4, %v2259_v26, %v2253_v27 }
 0xe66   :  { %v2261_v34 = vsel %vm1651_vm7, %v2260_v31, %v2257_v29 }
 0xe67   :  { %5075 = vmatmul.mubr.msk.f32.vlgmr.msra.gmra.mrb[26].mxu0 %vm206_vm0, %v2261_v34 }
 0xe68   :  { %5331 = vmatpush3.bf16.msra.mxu0 %v5328_v13 }
 0xe69   :  { %5333 = vmatprep.subr.bf16.mxu0 %v5332_v45 }
 0xe6c   :  { %5335 = vmatpush3.bf16.msra.mxu0 %v5332_v45 }
 0xe6d   :  { %5110 = vmatprep.subr.mxu0 %v6354_v49 }
 0xf3a   :  { %v5076_v21 = vpop.f32.mrb[26].mxu0 }
 0xf3b   :  { %v2351_v53 = vadd.f32 %v5076_v21, %v4679_v50  ;;  %v2345_v55 = vpop.f32.mrb[27].mxu0 }
 0xf3c   :  { %v2346_v32 = vadd.f32 %v4679_v50, %v2345_v55 }
 0xf3d   :  { %v2358_v56 = vmul.f32 %v2356_v52, %v2351_v53 }
 0xf3e   :  { %v2357_v58 = vmul.f32 %v2355_v28, %v2346_v32 }
 0xf3f   :  { %v2363_v62 = vadd.f32 %v2361_v33, %v2358_v56 }
 0xf40   :  { %v2362_v61 = vadd.f32 %v2360_v57, %v2357_v58 }
 0xf42   :  { %5085 = vmatprep.mubr.msk.f32.mxu1 %vm206_vm0, %v2362_v61  ;;  %5096 = vmatprep.mubr.msk.f32.mxu0 %vm206_vm0, %v2362_v61 }
 0xf43   :  { %5086 = vmatmul.mubr.msk.f32.vlgmr.msra.gmra.mrb[20].mxu1 %vm206_vm0, %v2363_v62  ;;  %5097 = vmatmul.mubr.msk.f32.vlgmr.msra.gmra.mrb[28].mxu0 %vm206_vm0, %v2363_v62 }
 0xf44   :  { %5339 = vmatpush3.bf16.msra.mxu1 %v5336_v25  ;;  %5107 = vmatprep.mubr.msk.f32.mxu1 %vm206_vm0, %v2362_v61 }
 0xf45   :  { %5341 = vmatprep.subr.bf16.mxu1 %v5340_v63  ;;  %5111 = vmatpush3.msra.mxu0 %v6354_v49 }
 0xf48   :  { %5343 = vmatpush3.bf16.msra.mxu1 %v5340_v63 }
 0xf4b   :  { %5108 = vmatmul.mubr.msk.f32.vlgmr.msra.gmra.mrb[22].mxu1 %vm206_vm0, %v2363_v62 }
0x1016   :  { %v6367_v0 = vpop.f32.mrb[20].mxu1  ;;  %v5098_v1 = vpop.f32.mrb[28].mxu0 }
0x1017   :  { %v2706_v2 = vmul.f32 0.4204482, %v5098_v1  ;;  %v6369_v22 = vpop.f32.mrb[21].mxu1  ;;  %v2521_v3 = vpop.f32.mrb[29].mxu0  ;;  %v6389_v15 = vmul.f32 0.4204482, %v6367_v0 }
0x1018   :  { %v2705_v4 = vmul.f32 0.4204482, %v2521_v3  ;;  %5112 = vmatprep.mubr.msk.f32.mxu0 %vm447_vm1, %v6369_v22  ;;  %v6374_v6 = vmul.f32 0.4204482, %v6369_v22 }
0x1019   :  { %5113 = vmatmul.mubr.msk.f32.vlgmr.msra.gmra.mrb[30].mxu0 %vm447_vm1, %v6367_v0 }
0x101a   :  { %5119 = vmatprep.mubr.msk.f32.mxu1 %vm447_vm1, %v6374_v6  ;;  %v5344_v7 = vpack.c.bf16 %v2706_v2, %v2705_v4  ;;  %v6380_v8 = vpack.i.bf16 %v2706_v2, %v2705_v4 }
0x101c   :  { %5346 = vmatprep.subr.msk.bf16.mxu1 %vm6099_vm2, %v5344_v7 }
0x101d   :  { %5349 = vmatpush3.bf16.xpose.msk.msra.mxu1 %vm6099_vm2, %v5344_v7 }
0x101e   :  { %v5109_v9 = vpop.f32.mrb[22].mxu1 }
0x101f   :  { %v2601_v10 = vpop.f32.mrb[23].mxu1 }
0x1020   :  { %v5350_v11 = vpack.c.bf16 %v5109_v9, %v2601_v10  ;;  %v6386_v14 = vpack.i.bf16 %v5109_v9, %v2601_v10 }
0x1022   :  { %5351 = vmatprep.subr.bf16.mxu0 %v5350_v11 }
0x1023   :  { %5353 = vmatpush3.bf16.msra.mxu0 %v5350_v11 }
0x1024   :  { %5120 = vmatmul.mubr.msk.f32.vlgmr.msra.gmra.mrb[24].mxu1 %vm447_vm1, %v6389_v15  ;;  %5129 = vmatprep.subr.mxu0 %v6354_v49 }
0x10ec   :  { %v5114_v16 = vpop.f32.mrb[30].mxu0 }
0x10ed   :  { %2697 = vrot.lane.b32.xlu1 %v5114_v16, %s5803_s21  ;;  %v2684_v17 = vpop.f32.mrb[31].mxu0 }
0x10ee   :  { %2695 = vrot.lane.b32.xlu0 %v2684_v17, %s5803_s21 }
0x10f7   :  { %v5121_v18 = vpop.f32.mrb[24].mxu1 }
0x10f8   :  { %v2785_v19 = vpop.f32.mrb[25].mxu1 }
0x115f   :  { %v2698_v24 = vpop.permute.xlu1 %2697 }
0x1160   :  { %v2702_v26 = vsel %vm447_vm1, %v5114_v16, %v2698_v24  ;;  %v2696_v27 = vpop.permute.xlu0 %2695 }
0x1161   :  { %v2791_v29 = vadd.f32 %v5121_v18, %v2702_v26  ;;  %v2701_v31 = vsel %vm447_vm1, %v2684_v17, %v2696_v27 }
0x1162   :  { %v2786_v34 = vadd.f32 %v2785_v19, %v2701_v31 }
0x1163   :  { %v2795_v35 = vsel %vm184_vm5, -1e+09, %v2791_v29 }
0x1164   :  { %v2799_v36 = vsel %vm632_vm4, %v2795_v35, -inf  ;;  %v2794_v37 = vsel %vm183_vm3, -1e+09, %v2786_v34 }
0x1165   :  { %2800 = vmax.xlane.f32.xlu1 %v2799_v36  ;;  %v2796_v38 = vsel %vm632_vm4, %v2794_v37, -inf }
0x1166   :  { %2797 = vmax.xlane.f32.xlu0 %v2796_v38 }
0x1176   :  { %2899 = vrot.lane.b32.xlu1 %v6369_v22, %s5812_s11 }
0x117a   :  { %5451 = vrot.lane.b32.xlu1 %v6380_v8, %s5812_s11 }
0x117e   :  { %2992 = vrot.lane.b32.xlu1 %v6374_v6, %s5812_s11 }
0x11f2   :  { %v2801_v39 = vpop.xlane.xlu1 %2800 }
0x11f3   :  { %v2803_v13 = vsub.f32 %v2795_v35, %v2801_v39  ;;  %v2798_v40 = vpop.xlane.xlu0 %2797 }
0x11f4   :  { %v2802_v41 = vsub.f32 %v2794_v37, %v2798_v40 }
0x11f5   :  { %v2806_v12 = vmul.f32 1.442695, %v2803_v13 }
0x11f6   :  { %v2804_v42 = vmul.f32 1.442695, %v2802_v41  ;;  %v2900_v43 = vpop.permute.xlu1 %2899 }
0x11f8   :  { %5512 = vpow2.f32 %v2804_v42 }
0x11f9   :  { %5514 = vpow2.f32 %v2806_v12 }
0x11fa   :  { %v5452_v45 = vpop.permute.xlu1 %5451 }
0x11fb   :  { %v5454_v46 = vunpack.i.h.bf16 %v5452_v45  ;;  %v5453_v47 = vunpack.i.l.bf16 %v5452_v45 }
0x11fd   :  { %v5354_v25 = vpack.c.bf16 %v5454_v46, %v5453_v47 }
0x11fe   :  { %v2993_v50 = vpop.permute.xlu1 %2992 }
0x11ff   :  { %5356 = vmatprep.subr.msk.bf16.mxu1 %vm6099_vm2, %v5354_v25  ;;  %5138 = vmatprep.mubr.msk.f32.mxu1 %vm447_vm1, %v2993_v50 }
0x1200   :  { %5359 = vmatpush3.bf16.xpose.msk.msra.mxu1 %vm6099_vm2, %v5354_v25 }
0x1202   :  { %v5513_v21 = vpop.eup %5512 }
0x1203   :  { %v2808_v52 = vsel %vm632_vm4, %v5513_v21, 0.0  ;;  %v5515_v53 = vpop.eup %5514 }
0x1204   :  { %2809 = vadd.xlane.f32.xlu0 %v2808_v52  ;;  %v2811_v55 = vsel %vm632_vm4, %v5515_v53, 0.0 }
0x1208   :  { %2812 = vadd.xlane.f32.xlu0 %v2811_v55 }
0x121e   :  { %2901 = vrot.lane.b32.xlu0 %v6367_v0, %s5812_s11 }
0x1222   :  { %2994 = vrot.lane.b32.xlu0 %v6389_v15, %s5812_s11 }
0x1291   :  { %v2810_v28 = vpop.xlane.xlu0 %2809 }
0x1292   :  { %5516 = vrcp.f32 %v2810_v28 }
0x1295   :  { %v2813_v32 = vpop.xlane.xlu0 %2812 }
0x1296   :  { %5518 = vrcp.f32 %v2813_v32 }
0x1299   :  { %v2902_v56 = vpop.permute.xlu0 %2901 }
0x129c   :  { %v5517_v57 = vpop.eup %5516 }
0x129d   :  { %v2995_v33 = vpop.permute.xlu0 %2994  ;;  %v2816_v58 = vmul.f32 %v5517_v57, %v5513_v21 }
0x129e   :  { %5139 = vmatmul.mubr.msk.f32.vlgmr.msra.gmra.mrb[26].mxu1 %vm447_vm1, %v2995_v33 }
0x129f   :  { %5126 = vmatprep.mubr.msk.f32.mxu0 %vm632_vm4, %v2816_v58 }
0x12a0   :  { %v5519_v59 = vpop.eup %5518 }
0x12a1   :  { %v2817_v60 = vmul.f32 %v5519_v59, %v5515_v53 }
0x12a3   :  { %5127 = vmatmul.mubr.msk.f32.vlgmr.msra.gmra.mrb[32].mxu0 %vm632_vm4, %v2817_v60 }
0x12a4   :  { %5130 = vmatpush3.msra.mxu0 %v6354_v49  ;;  %5131 = vmatprep.mubr.msk.f32.mxu0 %vm447_vm1, %v2900_v43 }
0x12a7   :  { %5132 = vmatmul.mubr.msk.f32.vlgmr.msra.gmra.mrb[34].mxu0 %vm447_vm1, %v2902_v56 }
0x1371   :  { %v5140_v61 = vpop.f32.mrb[26].mxu1 }
0x1372   :  { %v3074_v62 = vpop.f32.mrb[27].mxu1 }
0x1376   :  { %v6427_v63 = vpop.f32.mrb[32].mxu0 }
0x1377   :  { %v6429_v1 = vpop.f32.mrb[33].mxu0 }
0x137a   :  { %v5133_v2 = vpop.f32.mrb[34].mxu0 }
0x137b   :  { %2986 = vrot.lane.b32.xlu0 %v5133_v2, %s5803_s21  ;;  %v2973_v3 = vpop.f32.mrb[35].mxu0 }
0x137c   :  { %2984 = vrot.lane.b32.xlu1 %v2973_v3, %s5803_s21 }
0x13ed   :  { %v2987_v4 = vpop.permute.xlu0 %2986 }
0x13ee   :  { %v2991_v7 = vsel %vm447_vm1, %v5133_v2, %v2987_v4  ;;  %v2985_v9 = vpop.permute.xlu1 %2984 }
0x13ef   :  { %v3080_v10 = vadd.f32 %v5140_v61, %v2991_v7  ;;  %v2990_v11 = vsel %vm447_vm1, %v2973_v3, %v2985_v9 }
0x13f0   :  { %v3075_v16 = vadd.f32 %v3074_v62, %v2990_v11 }
0x13f1   :  { %v3084_v17 = vsel %vm184_vm5, -1e+09, %v3080_v10 }
0x13f2   :  { %v3088_v18 = vsel %vm632_vm4, %v3084_v17, -inf  ;;  %v3083_v19 = vsel %vm183_vm3, -1e+09, %v3075_v16 }
0x13f3   :  { %3089 = vmax.xlane.f32.xlu0 %v3088_v18  ;;  %v3085_v24 = vsel %vm632_vm4, %v3083_v19, -inf }
0x13f4   :  { %3086 = vmax.xlane.f32.xlu1 %v3085_v24 }
0x1480   :  { %v3090_v26 = vpop.xlane.xlu0 %3089 }
0x1481   :  { %v3092_v27 = vsub.f32 %v3084_v17, %v3090_v26  ;;  %v3087_v29 = vpop.xlane.xlu1 %3086 }
0x1482   :  { %v3091_v31 = vsub.f32 %v3083_v19, %v3087_v29 }
0x1483   :  { %v3095_v34 = vmul.f32 1.442695, %v3092_v27 }
0x1484   :  { %v3093_v35 = vmul.f32 1.442695, %v3091_v31 }
0x1485   :  { %5520 = vpow2.f32 %v3095_v34 }
0x1486   :  { %5522 = vpow2.f32 %v3093_v35 }
0x148f   :  { %v5521_v36 = vpop.eup %5520 }
0x1490   :  { %v5523_v37 = vpop.eup %5522  ;;  %v3100_v38 = vsel %vm632_vm4, %v5521_v36, 0.0 }
0x1491   :  { %3101 = vadd.xlane.f32.xlu1 %v3100_v38  ;;  %v3097_v39 = vsel %vm632_vm4, %v5523_v37, 0.0 }
0x1492   :  { %3098 = vadd.xlane.f32.xlu0 %v3097_v39 }
0x14a2   :  { %3196 = vrot.lane.b32.xlu1 %v6369_v22, %s5813_s16 }
0x14a6   :  { %3198 = vrot.lane.b32.xlu1 %v6367_v0, %s5813_s16 }
0x14a8   :  { %5456 = vrot.lane.b32.xlu0 %v6386_v14, %s5812_s11 }
0x14aa   :  { %3289 = vrot.lane.b32.xlu1 %v6374_v6, %s5813_s16 }
0x14ac   :  { %5461 = vrot.lane.b32.xlu0 %v6380_v8, %s5813_s16 }
0x14b0   :  { %3291 = vrot.lane.b32.xlu0 %v6389_v15, %s5813_s16 }
0x151e   :  { %v3102_v13 = vpop.xlane.xlu1 %3101 }
0x151f   :  { %5524 = vrcp.f32 %v3102_v13  ;;  %v3099_v40 = vpop.xlane.xlu0 %3098 }
0x1520   :  { %5526 = vrcp.f32 %v3099_v40 }
0x1522   :  { %v3197_v41 = vpop.permute.xlu1 %3196 }
0x1523   :  { %v5457_v12 = vpop.permute.xlu0 %5456 }
0x1524   :  { %v5459_v42 = vunpack.i.h.bf16 %v5457_v12  ;;  %v5458_v43 = vunpack.i.l.bf16 %v5457_v12 }
0x1526   :  { %v5360_v45 = vpack.c.bf16 %v5459_v42, %v5458_v43  ;;  %v3199_v46 = vpop.permute.xlu1 %3198 }
0x1527   :  { %v5462_v47 = vpop.permute.xlu0 %5461 }
0x1528   :  { %v5464_v25 = vunpack.i.h.bf16 %v5462_v47  ;;  %v5463_v50 = vunpack.i.l.bf16 %v5462_v47  ;;  %5361 = vmatprep.subr.bf16.mxu0 %v5360_v45 }
0x1529   :  { %v5525_v21 = vpop.eup %5524  ;;  %5363 = vmatpush3.bf16.msra.mxu0 %v5360_v45 }
0x152a   :  { %v5527_v52 = vpop.eup %5526  ;;  %v5364_v53 = vpack.c.bf16 %v5464_v25, %v5463_v50  ;;  %v3290_v55 = vpop.permute.xlu1 %3289  ;;  %5148 = vmatprep.subr.mxu0 %v6354_v49  ;;  %v3106_v32 = vmul.f32 %v5525_v21, %v5521_v36 }
0x152b   :  { %5157 = vmatprep.mubr.msk.f32.mxu1 %vm447_vm1, %v3290_v55  ;;  %v3105_v28 = vmul.f32 %v5527_v52, %v5523_v37  ;;  %v3292_v56 = vpop.permute.xlu0 %3291 }
0x152c   :  { %5366 = vmatprep.subr.msk.bf16.mxu1 %vm6099_vm2, %v5364_v53 }
0x152d   :  { %5145 = vmatprep.mubr.msk.f32.mxu0 %vm632_vm4, %v3105_v28  ;;  %5369 = vmatpush3.bf16.xpose.msk.msra.mxu1 %vm6099_vm2, %v5364_v53 }
0x152e   :  { %5146 = vmatmul.mubr.msk.f32.vlgmr.msra.gmra.mrb[36].mxu0 %vm632_vm4, %v3106_v32 }
0x152f   :  { %5149 = vmatpush3.msra.mxu0 %v6354_v49  ;;  %5150 = vmatprep.mubr.msk.f32.mxu0 %vm447_vm1, %v3197_v41 }
0x1532   :  { %5151 = vmatmul.mubr.msk.f32.vlgmr.msra.gmra.mrb[38].mxu0 %vm447_vm1, %v3199_v46 }
0x1534   :  { %5158 = vmatmul.mubr.msk.f32.vlgmr.msra.gmra.mrb[28].mxu1 %vm447_vm1, %v3292_v56 }
0x1601   :  { %v6467_v57 = vpop.f32.mrb[36].mxu0 }
0x1602   :  { %v6469_v33 = vpop.f32.mrb[37].mxu0 }
0x1605   :  { %v5152_v58 = vpop.f32.mrb[38].mxu0 }
0x1606   :  { %3283 = vrot.lane.b32.xlu0 %v5152_v58, %s5803_s21  ;;  %v3270_v59 = vpop.f32.mrb[39].mxu0 }
0x1607   :  { %v5159_v60 = vpop.f32.mrb[28].mxu1  ;;  %3281 = vrot.lane.b32.xlu1 %v3270_v59, %s5803_s21 }
0x1608   :  { %v3371_v61 = vpop.f32.mrb[29].mxu1 }
0x1678   :  { %v3284_v62 = vpop.permute.xlu0 %3283 }
0x1679   :  { %v3288_v2 = vsel %vm447_vm1, %v5152_v58, %v3284_v62  ;;  %v3282_v3 = vpop.permute.xlu1 %3281 }
0x167a   :  { %v3377_v4 = vadd.f32 %v5159_v60, %v3288_v2  ;;  %v3287_v7 = vsel %vm447_vm1, %v3270_v59, %v3282_v3 }
0x167b   :  { %v3372_v9 = vadd.f32 %v3371_v61, %v3287_v7 }
0x167c   :  { %v3381_v10 = vsel %vm184_vm5, -1e+09, %v3377_v4 }
0x167d   :  { %v3385_v11 = vsel %vm632_vm4, %v3381_v10, -inf  ;;  %v3380_v16 = vsel %vm183_vm3, -1e+09, %v3372_v9 }
0x167e   :  { %3386 = vmax.xlane.f32.xlu0 %v3385_v11  ;;  %v3382_v17 = vsel %vm632_vm4, %v3380_v16, -inf }
0x167f   :  { %3383 = vmax.xlane.f32.xlu1 %v3382_v17 }
0x170b   :  { %v3387_v18 = vpop.xlane.xlu0 %3386 }
0x170c   :  { %v3389_v19 = vsub.f32 %v3381_v10, %v3387_v18  ;;  %v3384_v24 = vpop.xlane.xlu1 %3383 }
0x170d   :  { %v3388_v26 = vsub.f32 %v3380_v16, %v3384_v24 }
0x170e   :  { %v3392_v27 = vmul.f32 1.442695, %v3389_v19 }
0x170f   :  { %v3390_v29 = vmul.f32 1.442695, %v3388_v26 }
0x1710   :  { %5528 = vpow2.f32 %v3392_v27 }
0x1711   :  { %5530 = vpow2.f32 %v3390_v29 }
0x171a   :  { %v5529_v31 = vpop.eup %5528 }
0x171b   :  { %v5531_v34 = vpop.eup %5530  ;;  %v3397_v35 = vsel %vm632_vm4, %v5529_v31, 0.0 }
0x171c   :  { %3398 = vadd.xlane.f32.xlu1 %v3397_v35  ;;  %v3394_v36 = vsel %vm632_vm4, %v5531_v34, 0.0 }
0x171d   :  { %3395 = vadd.xlane.f32.xlu0 %v3394_v36 }
0x172d   :  { %3491 = vrot.lane.b32.xlu1 %v6369_v22, %s5814_s26 }
0x1731   :  { %3493 = vrot.lane.b32.xlu1 %v6367_v0, %s5814_s26 }
0x1733   :  { %5466 = vrot.lane.b32.xlu0 %v6386_v14, %s5813_s16 }
0x1735   :  { %3584 = vrot.lane.b32.xlu1 %v6374_v6, %s5814_s26 }
0x1737   :  { %5471 = vrot.lane.b32.xlu0 %v6380_v8, %s5814_s26 }
0x173b   :  { %3586 = vrot.lane.b32.xlu0 %v6389_v15, %s5814_s26 }
0x17a9   :  { %v3399_v37 = vpop.xlane.xlu1 %3398 }
0x17aa   :  { %5532 = vrcp.f32 %v3399_v37  ;;  %v3396_v38 = vpop.xlane.xlu0 %3395 }
0x17ab   :  { %5534 = vrcp.f32 %v3396_v38 }
0x17ad   :  { %v3492_v22 = vpop.permute.xlu1 %3491 }
0x17ae   :  { %v5467_v39 = vpop.permute.xlu0 %5466 }
0x17af   :  { %v5469_v13 = vunpack.i.h.bf16 %v5467_v39  ;;  %v5468_v0 = vunpack.i.l.bf16 %v5467_v39 }
0x17b1   :  { %v5370_v40 = vpack.c.bf16 %v5469_v13, %v5468_v0  ;;  %v3494_v41 = vpop.permute.xlu1 %3493 }
0x17b2   :  { %v5472_v12 = vpop.permute.xlu0 %5471 }
0x17b3   :  { %v5474_v42 = vunpack.i.h.bf16 %v5472_v12  ;;  %v5473_v43 = vunpack.i.l.bf16 %v5472_v12  ;;  %5371 = vmatprep.subr.bf16.mxu0 %v5370_v40 }
0x17b4   :  { %v5533_v6 = vpop.eup %5532  ;;  %5373 = vmatpush3.bf16.msra.mxu0 %v5370_v40 }
0x17b5   :  { %v5535_v8 = vpop.eup %5534  ;;  %v5374_v45 = vpack.c.bf16 %v5474_v42, %v5473_v43  ;;  %v3585_v46 = vpop.permute.xlu1 %3584  ;;  %5167 = vmatprep.subr.mxu0 %v6354_v49  ;;  %v3403_v47 = vmul.f32 %v5533_v6, %v5529_v31  ;;  %v4414_v42 = vld [vmem:[#allocation14 + $0x28] sm:$0xff]  ;;  %v4416_v6 = vld [vmem:[#allocation14 + $0x38] sm:$0xff] }
0x17b6   :  { %5176 = vmatprep.mubr.msk.f32.mxu1 %vm447_vm1, %v3585_v46  ;;  %v3402_v15 = vmul.f32 %v5535_v8, %v5531_v34  ;;  %v3587_v25 = vpop.permute.xlu0 %3586 }
0x17b7   :  { %5376 = vmatprep.subr.msk.bf16.mxu1 %vm6099_vm2, %v5374_v45 }
0x17b8   :  { %5164 = vmatprep.mubr.msk.f32.mxu0 %vm632_vm4, %v3402_v15  ;;  %5379 = vmatpush3.bf16.xpose.msk.msra.mxu1 %vm6099_vm2, %v5374_v45 }
0x17b9   :  { %5165 = vmatmul.mubr.msk.f32.vlgmr.msra.gmra.mrb[40].mxu0 %vm632_vm4, %v3403_v47  ;;  %5191 = vmatprep.subr.mxu1 %v5816_v5  ;;  %v4507_v47 = vld [vmem:[#allocation17 + $0x8] sm:$0xff] }
0x17ba   :  { %5168 = vmatpush3.msra.mxu0 %v6354_v49  ;;  %5169 = vmatprep.mubr.msk.f32.mxu0 %vm447_vm1, %v3492_v22 }
0x17bd   :  { %5170 = vmatmul.mubr.msk.f32.vlgmr.msra.gmra.mrb[42].mxu0 %vm447_vm1, %v3494_v41 }
0x17bf   :  { %5177 = vmatmul.mubr.msk.f32.vlgmr.msra.gmra.mrb[30].mxu1 %vm447_vm1, %v3587_v25 }
0x17c0   :  { %5193 = vmatprep.mubr.msk.f32.mxu1 %vm5817_vm6, %v5816_v5 }
0x188c   :  { %v5166_v50 = vpop.f32.mrb[40].mxu0 }
0x188d   :  { %v3482_v21 = vpop.f32.mrb[41].mxu0 }
0x1890   :  { %v5171_v30 = vpop.f32.mrb[42].mxu0 }
0x1891   :  { %3578 = vrot.lane.b32.xlu0 %v5171_v30, %s5803_s21  ;;  %v3565_v52 = vpop.f32.mrb[43].mxu0 }
0x1892   :  { %3576 = vrot.lane.b32.xlu1 %v3565_v52, %s5803_s21  ;;  %v5178_v53 = vpop.f32.mrb[30].mxu1 }
0x1893   :  { %v3666_v49 = vpop.f32.mrb[31].mxu1 }
0x1903   :  { %v3579_v55 = vpop.permute.xlu0 %3578 }
0x1904   :  { %v3583_v28 = vsel %vm447_vm1, %v5171_v30, %v3579_v55  ;;  %v3577_v32 = vpop.permute.xlu1 %3576 }
0x1905   :  { %v3672_v56 = vadd.f32 %v5178_v53, %v3583_v28  ;;  %v3582_v58 = vsel %vm447_vm1, %v3565_v52, %v3577_v32 }
0x1906   :  { %v3667_v59 = vadd.f32 %v3666_v49, %v3582_v58 }
0x1907   :  { %v3676_v60 = vsel %vm184_vm5, -1e+09, %v3672_v56 }
0x1908   :  { %v3680_v61 = vsel %vm632_vm4, %v3676_v60, -inf  ;;  %v3675_v62 = vsel %vm183_vm3, -1e+09, %v3667_v59 }
0x1909   :  { %3681 = vmax.xlane.f32.xlu0 %v3680_v61  ;;  %v3677_v2 = vsel %vm632_vm4, %v3675_v62, -inf }
0x190a   :  { %3678 = vmax.xlane.f32.xlu1 %v3677_v2 }
0x1996   :  { %v3682_v3 = vpop.xlane.xlu0 %3681 }
0x1997   :  { %v3684_v4 = vsub.f32 %v3676_v60, %v3682_v3  ;;  %v3679_v7 = vpop.xlane.xlu1 %3678 }
0x1998   :  { %v3683_v9 = vsub.f32 %v3675_v62, %v3679_v7 }
0x1999   :  { %v3687_v10 = vmul.f32 1.442695, %v3684_v4 }
0x199a   :  { %v3685_v11 = vmul.f32 1.442695, %v3683_v9 }
0x199b   :  { %5536 = vpow2.f32 %v3687_v10 }
0x199c   :  { %5538 = vpow2.f32 %v3685_v11 }
0x19a5   :  { %v5537_v16 = vpop.eup %5536 }
0x19a6   :  { %v5539_v48 = vpop.eup %5538  ;;  %v3692_v17 = vsel %vm632_vm4, %v5537_v16, 0.0 }
0x19a7   :  { %3693 = vadd.xlane.f32.xlu1 %v3692_v17  ;;  %v3689_v44 = vsel %vm632_vm4, %v5539_v48, 0.0  ;;  %v4509_v17 = vld [vmem:[#allocation17 + $0x18] sm:$0xff] }
0x19a8   :  { %3690 = vadd.xlane.f32.xlu0 %v3689_v44 }
0x19b8   :  { %3788 = vrot.lane.b32.xlu1 %v6469_v33, %s5803_s21 }
0x19bc   :  { %3796 = vrot.lane.b32.xlu1 %v3482_v21, %s5815_s17 }
0x19be   :  { %5476 = vrot.lane.b32.xlu0 %v6386_v14, %s5814_s26 }
0x19c0   :  { %3790 = vrot.lane.b32.xlu1 %v6467_v57, %s5803_s21 }
0x1a34   :  { %v3694_v18 = vpop.xlane.xlu1 %3693 }
0x1a35   :  { %5540 = vrcp.f32 %v3694_v18  ;;  %v3691_v19 = vpop.xlane.xlu0 %3690  ;;  %v4737_v18 = vld [vmem:[%s6632_s8 + $0x1] ss:$0 sm:$0xff]  ;;  %s5764_s8 = scalar_lea.vmem %s4606_s0, 256 }
0x1a36   :  { %5542 = vrcp.f32 %v3691_v19  ;;  %p5765_p10 = scmp.ne.s32.totalorder %s4606_s0, %s5764_s8  ;;  %p5770_p12 = scmp.lt.s32.totalorder %s5764_s8, %s5764_s8 }
0x1a38   :  { %v3789_v36 = vpop.permute.xlu1 %3788  ;;  %p5771_p13 = por %p5770_p12, %p5769_p11 }
0x1a39   :  { %v5477_v24 = vpop.permute.xlu0 %5476  ;;  %v3810_v38 = vsel %vm447_vm1, %v6429_v1, %v3789_v36 }
0x1a3a   :  { %v5479_v26 = vunpack.i.h.bf16 %v5477_v24  ;;  %v5478_v27 = vunpack.i.l.bf16 %v5477_v24  ;;  %p5772_p0 = pnand %p5771_p13, %p5765_p10 }
0x1a3c   :  { %v5380_v29 = vpack.c.bf16 %v5479_v26, %v5478_v27  ;;  %v3797_v37 = vpop.permute.xlu1 %3796 }
0x1a3d   :  { %v3812_v22 = vsel %vm632_vm4, %v3810_v38, %v3797_v37 }
0x1a3e   :  { %5381 = vmatprep.subr.bf16.mxu0 %v5380_v29 }
0x1a3f   :  { %v5541_v31 = vpop.eup %5540  ;;  %5383 = vmatpush3.bf16.msra.mxu0 %v5380_v29  ;;  %v4740_v29 = vld [vmem:[%s6636_s12] ss:$0 sm:$0xff] }
0x1a40   :  { %v5543_v33 = vpop.eup %5542  ;;  %5186 = vmatprep.subr.mxu0 %v5816_v5  ;;  %v3698_v35 = vmul.f32 %v5541_v31, %v5537_v16  ;;  %v3791_v0 = vpop.permute.xlu1 %3790 }
0x1a41   :  { %v3697_v34 = vmul.f32 %v5543_v33, %v5539_v48  ;;  %v3811_v41 = vsel %vm447_vm1, %v6427_v63, %v3791_v0  ;;  %v4508_v48 = vld [vmem:[#allocation17 + $0x10] sm:$0xff] }
0x1a42   :  { %v5396_v44 = vpack.c.bf16 %v4509_v17, %v4508_v48 }
0x1a43   :  { %5183 = vmatprep.mubr.msk.f32.mxu0 %vm632_vm4, %v3697_v34 }
0x1a44   :  { %5184 = vmatmul.mubr.msk.f32.vlgmr.msra.gmra.mrb[44].mxu0 %vm632_vm4, %v3698_v35 }
0x1a45   :  { %5188 = vmatprep.mubr.msk.f32.mxu0 %vm5817_vm6, %v5816_v5 }
0x1b17   :  { %v5185_v14 = vpop.f32.mrb[44].mxu0 }
0x1b18   :  { %3806 = vrot.lane.b32.xlu1 %v5185_v14, %s5818_s7  ;;  %v3777_v57 = vpop.f32.mrb[45].mxu0 }
0x1b19   :  { %3804 = vrot.lane.b32.xlu0 %v3777_v57, %s5818_s7 }
0x1b1d   :  { %3798 = vrot.lane.b32.xlu0 %v5166_v50, %s5815_s17 }
0x1b8a   :  { %v3807_v12 = vpop.permute.xlu1 %3806 }
0x1b8b   :  { %v3805_v39 = vpop.permute.xlu0 %3804 }
0x1b8c   :  { %v3814_v13 = vsel %vm1651_vm7, %v3812_v22, %v3805_v39 }
0x1b8d   :  { %5187 = vmatpush3.xpose.msk.msra.mxu0 %vm206_vm0, %v3814_v13  ;;  %5192 = vmatpush3.xpose.msk.msra.mxu1 %vm206_vm0, %v3814_v13 }
0x1b8e   :  { %5196 = vmatprep.subr.mxu0 %v5816_v5  ;;  %5201 = vmatprep.subr.mxu1 %v5816_v5 }
0x1b8f   :  { %v3799_v40 = vpop.permute.xlu0 %3798 }
0x1b90   :  { %5189 = vmatmul.mubr.msk.f32.vlgmr.msra.gmra.mrb[46].mxu0 %vm206_vm0, %v6279_v23  ;;  %5194 = vmatmul.mubr.msk.f32.vlgmr.msra.gmra.mrb[32].mxu1 %vm206_vm0, %v6284_v51  ;;  %v3813_v1 = vsel %vm632_vm4, %v3811_v41, %v3799_v40 }
0x1b91   :  { %5197 = vmatpush3.xpose.msk.msra.mxu0 %vm206_vm0, %v3814_v13  ;;  %5202 = vmatpush3.xpose.msk.msra.mxu1 %vm206_vm0, %v3814_v13  ;;  %v3815_v63 = vsel %vm1651_vm7, %v3813_v1, %v3807_v12 }
0x1b92   :  { %5198 = vmatprep.mubr.msk.f32.mxu0 %vm5817_vm6, %v5816_v5  ;;  %5203 = vmatprep.mubr.msk.f32.mxu1 %vm5817_vm6, %v5816_v5 }
0x1b93   :  { %5206 = vmatprep.subr.mxu0 %v5816_v5  ;;  %5211 = vmatprep.subr.mxu1 %v5816_v5 }
0x1b94   :  { %5199 = vmatmul.mubr.msk.f32.vlgmr.msra.gmra.mrb[48].mxu0 %vm206_vm0, %v6300_v54  ;;  %5204 = vmatmul.mubr.msk.f32.vlgmr.msra.gmra.mrb[34].mxu1 %vm206_vm0, %v6305_v20 }
0x1b95   :  { %5207 = vmatpush3.xpose.msk.msra.mxu0 %vm206_vm0, %v3815_v63  ;;  %5212 = vmatpush3.xpose.msk.msra.mxu1 %vm206_vm0, %v3815_v63 }
0x1b96   :  { %5208 = vmatprep.mubr.msk.f32.mxu0 %vm5817_vm6, %v5816_v5  ;;  %5213 = vmatprep.mubr.msk.f32.mxu1 %vm5817_vm6, %v5816_v5 }
0x1b97   :  { %5216 = vmatprep.subr.mxu0 %v5816_v5  ;;  %5221 = vmatprep.subr.mxu1 %v5816_v5 }
0x1b98   :  { %5209 = vmatmul.mubr.msk.f32.vlgmr.msra.gmra.mrb[50].mxu0 %vm206_vm0, %v6279_v23  ;;  %5214 = vmatmul.mubr.msk.f32.vlgmr.msra.gmra.mrb[36].mxu1 %vm206_vm0, %v6284_v51  ;;  %v4413_v23 = vld [vmem:[#allocation14 + $0x20] sm:$0xff]  ;;  %v4415_v51 = vld [vmem:[#allocation14 + $0x30] sm:$0xff] }
0x1b99   :  { %5217 = vmatpush3.xpose.msk.msra.mxu0 %vm206_vm0, %v3815_v63  ;;  %5222 = vmatpush3.xpose.msk.msra.mxu1 %vm206_vm0, %v3815_v63  ;;  %v5384_v43 = vpack.c.bf16 %v4414_v42, %v4413_v23  ;;  %v5388_v8 = vpack.c.bf16 %v4416_v6, %v4415_v51 }
0x1b9a   :  { %5218 = vmatprep.mubr.msk.f32.mxu0 %vm5817_vm6, %v5816_v5  ;;  %5223 = vmatprep.mubr.msk.f32.mxu1 %vm5817_vm6, %v5816_v5 }
0x1b9b   :  { %5385 = vmatprep.subr.bf16.mxu0 %v5384_v43 }
0x1b9c   :  { %5219 = vmatmul.mubr.msk.f32.vlgmr.msra.gmra.mrb[52].mxu0 %vm206_vm0, %v6300_v54  ;;  %5224 = vmatmul.mubr.msk.f32.vlgmr.msra.gmra.mrb[38].mxu1 %vm206_vm0, %v6305_v20  ;;  %v4506_v54 = vld [vmem:[#allocation17] sm:$0xff] }
0x1b9d   :  { %5387 = vmatpush3.bf16.msra.mxu0 %v5384_v43  ;;  %v5392_v25 = vpack.c.bf16 %v4507_v47, %v4506_v54 }
0x1b9e   :  { %5389 = vmatprep.subr.bf16.mxu0 %v5388_v8 }
0x1b9f   :  { %5393 = vmatprep.subr.bf16.mxu1 %v5392_v25 }
0x1ba0   :  { %5395 = vmatpush3.bf16.msra.mxu1 %v5392_v25 }
0x1ba1   :  { %5391 = vmatpush3.bf16.msra.mxu0 %v5388_v8  ;;  %5397 = vmatprep.subr.bf16.mxu1 %v5396_v44 }
0x1ba4   :  { %5399 = vmatpush3.bf16.msra.mxu1 %v5396_v44 }
0x1c63   :  { %v3885_v45 = vpop.f32.mrb[46].mxu0  ;;  %v3955_v46 = vpop.f32.mrb[32].mxu1 }
0x1c64   :  { %4100 = vrot.lane.b32.xlu0 %v3955_v46, %s5803_s21  ;;  %v5190_v5 = vpop.f32.mrb[47].mxu0  ;;  %v5195_v15 = vpop.f32.mrb[33].mxu1 }
0x1c67   :  { %v4025_v20 = vpop.f32.mrb[48].mxu0  ;;  %v4095_v50 = vpop.f32.mrb[34].mxu1 }
0x1c68   :  { %v5205_v21 = vpop.f32.mrb[35].mxu1  ;;  %4104 = vrot.lane.b32.xlu1 %v4025_v20, %s5815_s17  ;;  %v5200_v30 = vpop.f32.mrb[49].mxu0 }
0x1c6b   :  { %v4183_v52 = vpop.f32.mrb[50].mxu0  ;;  %v4253_v53 = vpop.f32.mrb[36].mxu1 }
0x1c6c   :  { %4108 = vrot.lane.b32.xlu1 %v4095_v50, %s5818_s7  ;;  %4398 = vrot.lane.b32.xlu0 %v4253_v53, %s5803_s21  ;;  %v5210_v49 = vpop.f32.mrb[51].mxu0  ;;  %v5215_v55 = vpop.f32.mrb[37].mxu1 }
0x1c6f   :  { %v4323_v28 = vpop.f32.mrb[52].mxu0  ;;  %v4393_v32 = vpop.f32.mrb[38].mxu1 }
0x1c70   :  { %4402 = vrot.lane.b32.xlu0 %v4323_v28, %s5815_s17  ;;  %v5220_v56 = vpop.f32.mrb[53].mxu0  ;;  %4406 = vrot.lane.b32.xlu1 %v4393_v32, %s5818_s7  ;;  %v5225_v58 = vpop.f32.mrb[39].mxu1 }
0x1cd6   :  { %v4101_v59 = vpop.permute.xlu0 %4100 }
0x1cd7   :  { %v4111_v61 = vsel %vm447_vm1, %v3885_v45, %v4101_v59 }
0x1cda   :  { %v4105_v60 = vpop.permute.xlu1 %4104 }
0x1cdb   :  { %v4112_v62 = vsel %vm632_vm4, %v4111_v61, %v4105_v60 }
0x1cde   :  { %v4399_v2 = vpop.permute.xlu0 %4398  ;;  %v4109_v3 = vpop.permute.xlu1 %4108 }
0x1cdf   :  { %v4113_v4 = vsel %vm1651_vm7, %v4112_v62, %v4109_v3  ;;  %v4409_v7 = vsel %vm447_vm1, %v4183_v52, %v4399_v2 }
0x1ce0   :  { %5234 = vmatprep.mubr.msk.f32.mxu0 %vm206_vm0, %v4113_v4 }
0x1ce2   :  { %v4403_v9 = vpop.permute.xlu0 %4402  ;;  %v4407_v10 = vpop.permute.xlu1 %4406 }
0x1ce3   :  { %v4410_v11 = vsel %vm632_vm4, %v4409_v7, %v4403_v9 }
0x1ce4   :  { %v4411_v16 = vsel %vm1651_vm7, %v4410_v11, %v4407_v10 }
0x1ce5   :  { %5235 = vmatmul.mubr.msk.f32.vlgmr.msra.gmra.mrb[54].mxu0 %vm206_vm0, %v4411_v16 }
0x1db8   :  { %v5236_v19 = vpop.f32.mrb[54].mxu0 }
0x1db9   :  { %v4497_v24 = vpop.f32.mrb[55].mxu0  ;;  %v4503_v27 = vadd.f32 %v5236_v19, %v4737_v18 }
0x1dba   :  { %v4498_v26 = vadd.f32 %v4737_v18, %v4497_v24 }
0x1dbc   :  { %5245 = vmatprep.mubr.msk.f32.mxu1 %vm206_vm0, %v4498_v26 }
0x1dbd   :  { %5246 = vmatmul.mubr.msk.f32.vlgmr.msra.gmra.mrb[40].mxu1 %vm206_vm0, %v4503_v27 }
0x1e90   :  { %v5247_v31 = vpop.f32.mrb[40].mxu1 }
0x1e91   :  { %v4595_v33 = vadd.f32 %v5247_v31, %v4740_v29  ;;  %v4589_v34 = vpop.f32.mrb[41].mxu1 }
0x1e92   :  { %v4590_v35 = vadd.f32 %v4740_v29, %v4589_v34 }
0x1e93   :  { %4599 = vst [vmem:[#allocation19 + $0x8] sm:$0xff] %v4595_v33 }
0x1e94   :  { %4598 = vst [vmem:[#allocation19] sm:$0xff] %v4590_v35 }
0x1e95   :  { %5775 = shalt.err (!%p5772_p0)
}
0x1e96   :  { %s5776_s12 = scalar_lea.hbm %s6637_s13, 256 }
0x1e97   :  { %p5777_p1 = scmp.ne.s32.totalorder %s6637_s13, %s5776_s12  ;;  %p5780_p2 = scmp.lt.u32.totalorder %s5776_s12, %s6637_s13 }
0x1e99   :  { %p5782_p3 = pnand %p5780_p2, %p5777_p1 }
0x1e9b   :  { %5785 = shalt.err (!%p5782_p3)
}
0x1e9c   :  { %4611 = dma.vmem_to_hbm [thread:$0]  %s4606_s0, 256, %s6637_s13, [#allocation4], %s5802_s20, %s5802_s20, %s5803_s21  }
0x1e9d   :  { %5798 = dma.done.wait [#allocation4], 256  }
0x1e9e   :  { %5799 = vsyncadd [#allocation4], 4294967040 }
0x1e9f   :  { %4615 = vsyncpa [#allocation3], 1 }
0x1ea0   :  { %4616 = vsyncpa [#allocation6], 1 }
0x1ea1   :  { %4617 = vsyncpa [#allocation9], 1 }
0x1ea2   :  { %4618 = vsyncpa [#allocation12], 1 }
0x1ea3   :  { %4619 = vsyncpa [#allocation15], 1 }
0x1ea4   :  { %4620 = vsyncpa [#allocation18], 1 }
0x1ea5   :  { %4621 = vsyncpa [#allocation4], 1 }

</bundles_post_ra>
